<compile_context>
chip_gen: v7x
topology: tpu7x:2x2x1
jax: 0.10.0
libtpu: 0.0.40
codegen_flags: <defaults>
</compile_context>

<pallas_src>
import functools

import jax
import jax.numpy as jnp
from jax import lax
from jax.experimental import pallas as pl
from jax.experimental.pallas import tpu as pltpu


def _set_upconv_kernel(xyz1_ref, xyz2_ref, feat1_ref, feat2_ref,
                       w1a_ref, w1b_ref, b1_ref, w2_ref, b2_ref,
                       w3a_ref, w3b_ref, b3_ref,
                       out_ref, z2_ref, *, nsample):
    t = pl.program_id(1)

    # Z2 = feat2 @ W1a + xyz2 @ W1b, computed once per batch element (t == 0) and
    # reused for every N1 tile of that batch element via the persistent VMEM scratch.
    @pl.when(t == 0)
    def _():
        z2_ref[...] = (
            jnp.dot(feat2_ref[0], w1a_ref[...], preferred_element_type=jnp.float32)
            + jnp.dot(xyz2_ref[0], w1b_ref[...], preferred_element_type=jnp.float32))

    xyz1 = xyz1_ref[0]     # (TN1, 3)
    xyz2 = xyz2_ref[0]     # (N2, 3)
    feat1 = feat1_ref[0]   # (TN1, C1)
    tn1 = xyz1.shape[0]
    n2 = xyz2.shape[0]

    # Row-argmin-equivalent distance: |xyz1|^2 is constant per row so it is dropped.
    dist = (jnp.sum(xyz2 * xyz2, axis=-1)[None, :]
            - 2.0 * jnp.dot(xyz1, xyz2.T, preferred_element_type=jnp.float32))

    iota = lax.broadcasted_iota(jnp.int32, (tn1, n2), 1)

    # K-nearest neighbors via K iterative row-argmins; only the cheap selection is
    # serial — the gather + MLP is batched over all K afterwards.  Order is irrelevant
    # (max-pooled), matching torch.topk(largest=False, sorted=False) + max over K.
    onehots = []
    for _ in range(nsample):
        minval = jnp.min(dist, axis=-1, keepdims=True)
        idx = jnp.min(jnp.where(dist == minval, iota, n2), axis=-1, keepdims=True)
        onehot = (iota == idx).astype(jnp.float32)          # (TN1, N2)
        onehots.append(onehot)
        dist = jnp.where(onehot > 0, jnp.inf, dist)          # exclude this neighbor

    sel = jnp.concatenate(onehots, axis=0)                   # (K*TN1, N2)

    # Layer 1 (hoisted through the gather): h1 = ReLU(onehot @ Z2 - c1)
    c1 = (jnp.dot(xyz1, w1b_ref[...], preferred_element_type=jnp.float32)
          - b1_ref[...])                                     # (TN1, H1)
    c1_rep = jnp.concatenate([c1] * nsample, axis=0)         # (K*TN1, H1)
    g = jnp.dot(sel, z2_ref[...], preferred_element_type=jnp.float32)
    h1 = jnp.maximum(g - c1_rep, 0.0)                        # (K*TN1, H1)

    # Layer 2, batched over all K neighbors at once.
    h2 = jnp.maximum(
        jnp.dot(h1, w2_ref[...], preferred_element_type=jnp.float32) + b2_ref[...],
        0.0)                                                 # (K*TN1, H2)

    # Max pool over K (static sublane-aligned slices, no reshape needed).
    maxed = h2[0:tn1]
    for k in range(1, nsample):
        maxed = jnp.maximum(maxed, h2[k * tn1:(k + 1) * tn1])

    # Final layer with the concat split into two summed matmuls.
    out = jnp.maximum(
        jnp.dot(maxed, w3a_ref[...], preferred_element_type=jnp.float32)
        + jnp.dot(feat1, w3b_ref[...], preferred_element_type=jnp.float32)
        + b3_ref[...], 0.0)
    out_ref[0] = out.astype(out_ref.dtype)


def set_upconv_forward(xyz1, xyz2, feat1, feat2, params, nsample, tile_n1=None):
    B, N1, _ = xyz1.shape
    _, N2, _ = xyz2.shape
    C1 = feat1.shape[-1]
    C2 = feat2.shape[-1]
    w1, b1, w2, b2, w3, b3 = params
    H2 = w2.shape[1]
    H3 = w3.shape[1]

    # Split concatenated-input weights once so the kernel never concatenates on lanes.
    w1a, w1b = w1[:C2], w1[C2:]      # (C2, H1), (3, H1)
    w3a, w3b = w3[:H2], w3[H2:]      # (H2, H3), (C1, H3)

    if tile_n1 is None:
        tile_n1 = min(N1, 256)       # bounds (TN1, N2) intermediates in VMEM
    assert N1 % tile_n1 == 0 and tile_n1 % 8 == 0
    nt = N1 // tile_n1

    kernel = functools.partial(_set_upconv_kernel, nsample=nsample)

    def tiled_spec(c):
        return pl.BlockSpec((1, tile_n1, c), lambda b, t: (b, t, 0))

    def full_pts_spec(c):
        return pl.BlockSpec((1, N2, c), lambda b, t: (b, 0, 0))

    def weight_spec(arr):
        return pl.BlockSpec(arr.shape, lambda b, t: (0, 0))

    return pl.pallas_call(
        kernel,
        out_shape=jax.ShapeDtypeStruct((B, N1, H3), jnp.float32),
        grid=(B, nt),
        in_specs=[tiled_spec(3), full_pts_spec(3), tiled_spec(C1), full_pts_spec(C2),
                  weight_spec(w1a), weight_spec(w1b), weight_spec(b1),
                  weight_spec(w2), weight_spec(b2),
                  weight_spec(w3a), weight_spec(w3b), weight_spec(b3)],
        out_specs=pl.BlockSpec((1, tile_n1, H3), lambda b, t: (b, t, 0)),
        scratch_shapes=[pltpu.VMEM((N2, w1.shape[1]), jnp.float32)],
        compiler_params=pltpu.CompilerParams(
            dimension_semantics=("parallel", "arbitrary")),
    )(xyz1, xyz2, feat1, feat2, w1a, w1b, b1, w2, b2, w3a, w3b, b3)


def init_folded_params(key, c1, c2, mlp, mlp2):
    """Deterministic conv weights + eval-mode BatchNorm folded into (W, b) pairs."""
    layer_dims = []
    last = c2 + 3
    for out in mlp:
        layer_dims.append((last, out))
        last = out
    last = (mlp[-1] + c1) if len(mlp) else (c2 + 3 + c1)
    for out in mlp2:
        layer_dims.append((last, out))
        last = out

    folded = []
    eps = 1e-5
    for (cin, cout) in layer_dims:
        key, k1, k2, k3, k4, k5, k6 = jax.random.split(key, 7)
        w = 0.1 * jax.random.normal(k1, (cin, cout), jnp.float32)      # conv weight
        b = 0.1 * jax.random.normal(k2, (cout,), jnp.float32)          # conv bias
        gamma = 1.0 + 0.1 * jax.random.normal(k3, (cout,), jnp.float32)
        beta = 0.1 * jax.random.normal(k4, (cout,), jnp.float32)
        rmean = 0.1 * jax.random.normal(k5, (cout,), jnp.float32)
        rvar = 1.0 + 0.1 * jax.random.uniform(k6, (cout,), jnp.float32)
        scale = gamma / jnp.sqrt(rvar + eps)
        wf = w * scale[None, :]
        bf = (b - rmean) * scale + beta
        folded.append((wf, bf.reshape(1, cout)))
    # mlp has 2 layers, mlp2 has 1 layer in this script
    (w1, b1), (w2, b2), (w3, b3) = folded
    return (w1, b1, w2, b2, w3, b3)


def reference_forward(xyz1, xyz2, feat1, feat2, params, nsample):
    """Pure-JAX reference mirroring the PyTorch forward (eval-mode BN folded)."""
    w1, b1, w2, b2, w3, b3 = params
    dist = (jnp.sum(xyz1 ** 2, -1)[:, :, None]
            + jnp.sum(xyz2 ** 2, -1)[:, None, :]
            - 2.0 * jnp.einsum('bnc,bmc->bnm', xyz1, xyz2))
    _, idx = lax.top_k(-dist, nsample)                       # (B, N1, K)
    g_xyz = jax.vmap(lambda p, i: p[i])(xyz2, idx)           # (B, N1, K, 3)
    g_feat = jax.vmap(lambda p, i: p[i])(feat2, idx)         # (B, N1, K, C2)
    xyz_diff = g_xyz - xyz1[:, :, None, :]
    net = jnp.concatenate([g_feat, xyz_diff], axis=-1)
    net = jnp.maximum(net @ w1 + b1[0], 0.0)
    net = jnp.maximum(net @ w2 + b2[0], 0.0)
    pooled = jnp.max(net, axis=2)                            # max pool over K
    cat = jnp.concatenate([pooled, feat1], axis=-1)
    return jnp.maximum(cat @ w3 + b3[0], 0.0)


if __name__ == "__main__":
    # SetUpconvModule(nsample=4, in_channels=[C1, C2], mlp=[32, 32], mlp2=[32], ...)
    B, N1, N2 = 2, 16, 32
    C1, C2 = 8, 16
    NSAMPLE = 4
    MLP = [32, 32]
    MLP2 = [32]

    key = jax.random.PRNGKey(0)
    k_x1, k_x2, k_f1, k_f2, k_p = jax.random.split(key, 5)
    xyz1 = jax.random.normal(k_x1, (B, N1, 3), jnp.float32)
    xyz2 = jax.random.normal(k_x2, (B, N2, 3), jnp.float32)
    feat1 = jax.random.normal(k_f1, (B, N1, C1), jnp.float32)
    feat2 = jax.random.normal(k_f2, (B, N2, C2), jnp.float32)

    params = init_folded_params(k_p, C1, C2, MLP, MLP2)

    out = set_upconv_forward(xyz1, xyz2, feat1, feat2, params, NSAMPLE)
    out = jax.block_until_ready(out)

    ref = reference_forward(xyz1, xyz2, feat1, feat2, params, NSAMPLE)
    assert out.shape == (B, N1, MLP2[-1]), out.shape
    assert jnp.allclose(out, ref, atol=1e-4, rtol=1e-4), float(jnp.max(jnp.abs(out - ref)))

    print("KERNEL_OK")
</pallas_src>

<mosaic_0001>
module attributes {stable_mosaic.version = 11 : i64} {
  func.func @_set_upconv_kernel(%arg0: i32, %arg1: i32, %arg2: memref<1x16x3xf32, #tpu.memory_space<vmem>>, %arg3: memref<1x32x3xf32, #tpu.memory_space<vmem>>, %arg4: memref<1x16x8xf32, #tpu.memory_space<vmem>>, %arg5: memref<1x32x16xf32, #tpu.memory_space<vmem>>, %arg6: memref<16x32xf32, #tpu.memory_space<vmem>>, %arg7: memref<3x32xf32, #tpu.memory_space<vmem>>, %arg8: memref<1x32xf32, #tpu.memory_space<vmem>>, %arg9: memref<32x32xf32, #tpu.memory_space<vmem>>, %arg10: memref<1x32xf32, #tpu.memory_space<vmem>>, %arg11: memref<32x32xf32, #tpu.memory_space<vmem>>, %arg12: memref<8x32xf32, #tpu.memory_space<vmem>>, %arg13: memref<1x32xf32, #tpu.memory_space<vmem>>, %arg14: memref<1x16x32xf32, #tpu.memory_space<vmem>>, %arg15: memref<32x32xf32, #tpu.memory_space<vmem>>) attributes {dimension_semantics = [#tpu.dimension_semantics<parallel>, #tpu.dimension_semantics<arbitrary>], iteration_bounds = array<i64: 2, 1>, scalar_prefetch = 0 : i64, scratch_operands = 1 : i64, tpu.core_type = #tpu.core_type<tc>, window_params = [{transform_indices = @transform_0, window_bounds = array<i64: 1, 16, 3>}, {transform_indices = @transform_1, window_bounds = array<i64: 1, 32, 3>}, {transform_indices = @transform_2, window_bounds = array<i64: 1, 16, 8>}, {transform_indices = @transform_3, window_bounds = array<i64: 1, 32, 16>}, {pipeline_mode = #tpu.pipeline_mode<synchronous>, transform_indices = @transform_4, window_bounds = array<i64: 16, 32>}, {pipeline_mode = #tpu.pipeline_mode<synchronous>, transform_indices = @transform_5, window_bounds = array<i64: 3, 32>}, {pipeline_mode = #tpu.pipeline_mode<synchronous>, transform_indices = @transform_6, window_bounds = array<i64: 1, 32>}, {pipeline_mode = #tpu.pipeline_mode<synchronous>, transform_indices = @transform_7, window_bounds = array<i64: 32, 32>}, {pipeline_mode = #tpu.pipeline_mode<synchronous>, transform_indices = @transform_8, window_bounds = array<i64: 1, 32>}, {pipeline_mode = #tpu.pipeline_mode<synchronous>, transform_indices = @transform_9, window_bounds = array<i64: 32, 32>}, {pipeline_mode = #tpu.pipeline_mode<synchronous>, transform_indices = @transform_10, window_bounds = array<i64: 8, 32>}, {pipeline_mode = #tpu.pipeline_mode<synchronous>, transform_indices = @transform_11, window_bounds = array<i64: 1, 32>}, {transform_indices = @transform_12, window_bounds = array<i64: 1, 16, 32>}]} {
    %c0_i32 = arith.constant 0 : i32
    %0 = arith.cmpi eq, %arg1, %c0_i32 : i32
    %1 = arith.extui %0 : i1 to i32
    %c0_i32_0 = arith.constant 0 : i32
    %2 = arith.cmpi ne, %1, %c0_i32_0 : i32
    scf.if %2 {
      %c0_55 = arith.constant 0 : index
      %c0_56 = arith.constant 0 : index
      %c0_57 = arith.constant 0 : index
      %118 = vector.load %arg5[%c0_55, %c0_56, %c0_57] : memref<1x32x16xf32, #tpu.memory_space<vmem>>, vector<1x32x16xf32>
      %119 = vector.shape_cast %118 : vector<1x32x16xf32> to vector<32x16xf32>
      %c0_58 = arith.constant 0 : index
      %c0_59 = arith.constant 0 : index
      %120 = vector.load %arg6[%c0_58, %c0_59] : memref<16x32xf32, #tpu.memory_space<vmem>>, vector<16x32xf32>
      %cst_60 = arith.constant dense<0.000000e+00> : vector<32x32xf32>
      %121 = tpu.matmul %119, %120, %cst_60 {dimension_numbers = #tpu.dot_dimension_numbers<[1], [0], [0], [1], [0, 0, 1, 1], [], []>} : vector<32x16xf32>, vector<16x32xf32>, vector<32x32xf32> -> vector<32x32xf32>
      %c0_61 = arith.constant 0 : index
      %c0_62 = arith.constant 0 : index
      %c0_63 = arith.constant 0 : index
      %122 = vector.load %arg3[%c0_61, %c0_62, %c0_63] : memref<1x32x3xf32, #tpu.memory_space<vmem>>, vector<1x32x3xf32>
      %123 = vector.shape_cast %122 : vector<1x32x3xf32> to vector<32x3xf32>
      %c0_64 = arith.constant 0 : index
      %c0_65 = arith.constant 0 : index
      %124 = vector.load %arg7[%c0_64, %c0_65] : memref<3x32xf32, #tpu.memory_space<vmem>>, vector<3x32xf32>
      %cst_66 = arith.constant dense<0.000000e+00> : vector<32x32xf32>
      %125 = tpu.matmul %123, %124, %cst_66 {dimension_numbers = #tpu.dot_dimension_numbers<[1], [0], [0], [1], [0, 0, 1, 1], [], []>} : vector<32x3xf32>, vector<3x32xf32>, vector<32x32xf32> -> vector<32x32xf32>
      %126 = arith.addf %121, %125 : vector<32x32xf32>
      %c0_67 = arith.constant 0 : index
      %c0_68 = arith.constant 0 : index
      %127 = vector.load %arg15[%c0_67, %c0_68] : memref<32x32xf32, #tpu.memory_space<vmem>>, vector<32x32xf32>
      tpu.vector_store %arg15[%c0_67, %c0_68], %126 {strides = array<i32>} : memref<32x32xf32, #tpu.memory_space<vmem>>, vector<32x32xf32>,
    } else {
    }
    %c0 = arith.constant 0 : index
    %c0_1 = arith.constant 0 : index
    %c0_2 = arith.constant 0 : index
    %3 = vector.load %arg2[%c0, %c0_1, %c0_2] : memref<1x16x3xf32, #tpu.memory_space<vmem>>, vector<1x16x3xf32>
    %4 = vector.shape_cast %3 : vector<1x16x3xf32> to vector<16x3xf32>
    %c0_3 = arith.constant 0 : index
    %c0_4 = arith.constant 0 : index
    %c0_5 = arith.constant 0 : index
    %5 = vector.load %arg3[%c0_3, %c0_4, %c0_5] : memref<1x32x3xf32, #tpu.memory_space<vmem>>, vector<1x32x3xf32>
    %6 = vector.shape_cast %5 : vector<1x32x3xf32> to vector<32x3xf32>
    %c0_6 = arith.constant 0 : index
    %c0_7 = arith.constant 0 : index
    %c0_8 = arith.constant 0 : index
    %7 = vector.load %arg4[%c0_6, %c0_7, %c0_8] : memref<1x16x8xf32, #tpu.memory_space<vmem>>, vector<1x16x8xf32>
    %8 = vector.shape_cast %7 : vector<1x16x8xf32> to vector<16x8xf32>
    %9 = arith.mulf %6, %6 : vector<32x3xf32>
    %cst = arith.constant dense<0.000000e+00> : vector<32xf32>
    %10 = vector.multi_reduction <add>, %9, %cst [1] : vector<32x3xf32> to vector<32xf32>
    %11 = vector.shape_cast %10 : vector<32xf32> to vector<1x32xf32>
    %12 = tpu.transpose %6, [1, 0] : vector<32x3xf32> -> vector<3x32xf32>
    %cst_9 = arith.constant dense<0.000000e+00> : vector<16x32xf32>
    %13 = tpu.matmul %4, %12, %cst_9 {dimension_numbers = #tpu.dot_dimension_numbers<[1], [0], [0], [1], [0, 0, 1, 1], [], []>} : vector<16x3xf32>, vector<3x32xf32>, vector<16x32xf32> -> vector<16x32xf32>
    %cst_10 = arith.constant 2.000000e+00 : f32
    %14 = vector.broadcast %cst_10 : f32 to vector<16x32xf32>
    %15 = arith.mulf %14, %13 : vector<16x32xf32>
    %16 = vector.broadcast %11 : vector<1x32xf32> to vector<16x32xf32>
    %17 = arith.subf %16, %15 : vector<16x32xf32>
    %18 = tpu.iota {dimensions = array<i32: 1>} : vector<16x32xi32>
    %cst_11 = arith.constant dense<0x7F800000> : vector<16xf32>
    %19 = vector.multi_reduction <minimumf>, %17, %cst_11 [1] : vector<16x32xf32> to vector<16xf32>
    %20 = vector.shape_cast %19 : vector<16xf32> to vector<16x1xf32>
    %21 = vector.broadcast %20 : vector<16x1xf32> to vector<16x32xf32>
    %22 = arith.cmpf oeq, %17, %21 : vector<16x32xf32>
    %c32_i32 = arith.constant 32 : i32
    %23 = vector.broadcast %c32_i32 : i32 to vector<16x32xi32>
    %24 = arith.select %22, %18, %23 : vector<16x32xi1>, vector<16x32xi32>
    %cst_12 = arith.constant dense<2147483647> : vector<16xi32>
    %25 = vector.multi_reduction <minsi>, %24, %cst_12 [1] : vector<16x32xi32> to vector<16xi32>
    %26 = vector.shape_cast %25 : vector<16xi32> to vector<16x1xi32>
    %27 = vector.broadcast %26 : vector<16x1xi32> to vector<16x32xi32>
    %28 = arith.cmpi eq, %18, %27 : vector<16x32xi32>
    %29 = arith.extui %28 : vector<16x32xi1> to vector<16x32xi32>
    %30 = arith.sitofp %29 : vector<16x32xi32> to vector<16x32xf32>
    %cst_13 = arith.constant 0.000000e+00 : f32
    %31 = vector.broadcast %cst_13 : f32 to vector<16x32xf32>
    %32 = arith.cmpf ogt, %30, %31 : vector<16x32xf32>
    %cst_14 = arith.constant 0x7F800000 : f32
    %33 = vector.broadcast %cst_14 : f32 to vector<16x32xf32>
    %34 = arith.select %32, %33, %17 : vector<16x32xi1>, vector<16x32xf32>
    %cst_15 = arith.constant dense<0x7F800000> : vector<16xf32>
    %35 = vector.multi_reduction <minimumf>, %34, %cst_15 [1] : vector<16x32xf32> to vector<16xf32>
    %36 = vector.shape_cast %35 : vector<16xf32> to vector<16x1xf32>
    %37 = vector.broadcast %36 : vector<16x1xf32> to vector<16x32xf32>
    %38 = arith.cmpf oeq, %34, %37 : vector<16x32xf32>
    %c32_i32_16 = arith.constant 32 : i32
    %39 = vector.broadcast %c32_i32_16 : i32 to vector<16x32xi32>
    %40 = arith.select %38, %18, %39 : vector<16x32xi1>, vector<16x32xi32>
    %cst_17 = arith.constant dense<2147483647> : vector<16xi32>
    %41 = vector.multi_reduction <minsi>, %40, %cst_17 [1] : vector<16x32xi32> to vector<16xi32>
    %42 = vector.shape_cast %41 : vector<16xi32> to vector<16x1xi32>
    %43 = vector.broadcast %42 : vector<16x1xi32> to vector<16x32xi32>
    %44 = arith.cmpi eq, %18, %43 : vector<16x32xi32>
    %45 = arith.extui %44 : vector<16x32xi1> to vector<16x32xi32>
    %46 = arith.sitofp %45 : vector<16x32xi32> to vector<16x32xf32>
    %cst_18 = arith.constant 0.000000e+00 : f32
    %47 = vector.broadcast %cst_18 : f32 to vector<16x32xf32>
    %48 = arith.cmpf ogt, %46, %47 : vector<16x32xf32>
    %cst_19 = arith.constant 0x7F800000 : f32
    %49 = vector.broadcast %cst_19 : f32 to vector<16x32xf32>
    %50 = arith.select %48, %49, %34 : vector<16x32xi1>, vector<16x32xf32>
    %cst_20 = arith.constant dense<0x7F800000> : vector<16xf32>
    %51 = vector.multi_reduction <minimumf>, %50, %cst_20 [1] : vector<16x32xf32> to vector<16xf32>
    %52 = vector.shape_cast %51 : vector<16xf32> to vector<16x1xf32>
    %53 = vector.broadcast %52 : vector<16x1xf32> to vector<16x32xf32>
    %54 = arith.cmpf oeq, %50, %53 : vector<16x32xf32>
    %c32_i32_21 = arith.constant 32 : i32
    %55 = vector.broadcast %c32_i32_21 : i32 to vector<16x32xi32>
    %56 = arith.select %54, %18, %55 : vector<16x32xi1>, vector<16x32xi32>
    %cst_22 = arith.constant dense<2147483647> : vector<16xi32>
    %57 = vector.multi_reduction <minsi>, %56, %cst_22 [1] : vector<16x32xi32> to vector<16xi32>
    %58 = vector.shape_cast %57 : vector<16xi32> to vector<16x1xi32>
    %59 = vector.broadcast %58 : vector<16x1xi32> to vector<16x32xi32>
    %60 = arith.cmpi eq, %18, %59 : vector<16x32xi32>
    %61 = arith.extui %60 : vector<16x32xi1> to vector<16x32xi32>
    %62 = arith.sitofp %61 : vector<16x32xi32> to vector<16x32xf32>
    %cst_23 = arith.constant 0.000000e+00 : f32
    %63 = vector.broadcast %cst_23 : f32 to vector<16x32xf32>
    %64 = arith.cmpf ogt, %62, %63 : vector<16x32xf32>
    %cst_24 = arith.constant 0x7F800000 : f32
    %65 = vector.broadcast %cst_24 : f32 to vector<16x32xf32>
    %66 = arith.select %64, %65, %50 : vector<16x32xi1>, vector<16x32xf32>
    %cst_25 = arith.constant dense<0x7F800000> : vector<16xf32>
    %67 = vector.multi_reduction <minimumf>, %66, %cst_25 [1] : vector<16x32xf32> to vector<16xf32>
    %68 = vector.shape_cast %67 : vector<16xf32> to vector<16x1xf32>
    %69 = vector.broadcast %68 : vector<16x1xf32> to vector<16x32xf32>
    %70 = arith.cmpf oeq, %66, %69 : vector<16x32xf32>
    %c32_i32_26 = arith.constant 32 : i32
    %71 = vector.broadcast %c32_i32_26 : i32 to vector<16x32xi32>
    %72 = arith.select %70, %18, %71 : vector<16x32xi1>, vector<16x32xi32>
    %cst_27 = arith.constant dense<2147483647> : vector<16xi32>
    %73 = vector.multi_reduction <minsi>, %72, %cst_27 [1] : vector<16x32xi32> to vector<16xi32>
    %74 = vector.shape_cast %73 : vector<16xi32> to vector<16x1xi32>
    %75 = vector.broadcast %74 : vector<16x1xi32> to vector<16x32xi32>
    %76 = arith.cmpi eq, %18, %75 : vector<16x32xi32>
    %77 = arith.extui %76 : vector<16x32xi1> to vector<16x32xi32>
    %78 = arith.sitofp %77 : vector<16x32xi32> to vector<16x32xf32>
    %79 = tpu.concatenate %30, %46, %62, %78 in 0 : vector<16x32xf32>, vector<16x32xf32>, vector<16x32xf32>, vector<16x32xf32> -> vector<64x32xf32>
    %c0_28 = arith.constant 0 : index
    %c0_29 = arith.constant 0 : index
    %80 = vector.load %arg7[%c0_28, %c0_29] : memref<3x32xf32, #tpu.memory_space<vmem>>, vector<3x32xf32>
    %cst_30 = arith.constant dense<0.000000e+00> : vector<16x32xf32>
    %81 = tpu.matmul %4, %80, %cst_30 {dimension_numbers = #tpu.dot_dimension_numbers<[1], [0], [0], [1], [0, 0, 1, 1], [], []>} : vector<16x3xf32>, vector<3x32xf32>, vector<16x32xf32> -> vector<16x32xf32>
    %c0_31 = arith.constant 0 : index
    %c0_32 = arith.constant 0 : index
    %82 = vector.load %arg8[%c0_31, %c0_32] : memref<1x32xf32, #tpu.memory_space<vmem>>, vector<1x32xf32>
    %83 = vector.broadcast %82 : vector<1x32xf32> to vector<16x32xf32>
    %84 = arith.subf %81, %83 : vector<16x32xf32>
    %85 = tpu.concatenate %84, %84, %84, %84 in 0 : vector<16x32xf32>, vector<16x32xf32>, vector<16x32xf32>, vector<16x32xf32> -> vector<64x32xf32>
    %c0_33 = arith.constant 0 : index
    %c0_34 = arith.constant 0 : index
    %86 = vector.load %arg15[%c0_33, %c0_34] : memref<32x32xf32, #tpu.memory_space<vmem>>, vector<32x32xf32>
    %cst_35 = arith.constant dense<0.000000e+00> : vector<64x32xf32>
    %87 = tpu.matmul %79, %86, %cst_35 {dimension_numbers = #tpu.dot_dimension_numbers<[1], [0], [0], [1], [0, 0, 1, 1], [], []>} : vector<64x32xf32>, vector<32x32xf32>, vector<64x32xf32> -> vector<64x32xf32>
    %88 = arith.subf %87, %85 : vector<64x32xf32>
    %cst_36 = arith.constant 0.000000e+00 : f32
    %89 = vector.broadcast %cst_36 : f32 to vector<64x32xf32>
    %90 = arith.maximumf %88, %89 : vector<64x32xf32>
    %c0_37 = arith.constant 0 : index
    %c0_38 = arith.constant 0 : index
    %91 = vector.load %arg9[%c0_37, %c0_38] : memref<32x32xf32, #tpu.memory_space<vmem>>, vector<32x32xf32>
    %cst_39 = arith.constant dense<0.000000e+00> : vector<64x32xf32>
    %92 = tpu.matmul %90, %91, %cst_39 {dimension_numbers = #tpu.dot_dimension_numbers<[1], [0], [0], [1], [0, 0, 1, 1], [], []>} : vector<64x32xf32>, vector<32x32xf32>, vector<64x32xf32> -> vector<64x32xf32>
    %c0_40 = arith.constant 0 : index
    %c0_41 = arith.constant 0 : index
    %93 = vector.load %arg10[%c0_40, %c0_41] : memref<1x32xf32, #tpu.memory_space<vmem>>, vector<1x32xf32>
    %94 = vector.broadcast %93 : vector<1x32xf32> to vector<64x32xf32>
    %95 = arith.addf %92, %94 : vector<64x32xf32>
    %cst_42 = arith.constant 0.000000e+00 : f32
    %96 = vector.broadcast %cst_42 : f32 to vector<64x32xf32>
    %97 = arith.maximumf %95, %96 : vector<64x32xf32>
    %98 = vector.extract_strided_slice %97 {offsets = [0, 0], sizes = [16, 32], strides = [1, 1]} : vector<64x32xf32> to vector<16x32xf32>
    %99 = vector.extract_strided_slice %97 {offsets = [16, 0], sizes = [16, 32], strides = [1, 1]} : vector<64x32xf32> to vector<16x32xf32>
    %100 = arith.maximumf %98, %99 : vector<16x32xf32>
    %101 = vector.extract_strided_slice %97 {offsets = [32, 0], sizes = [16, 32], strides = [1, 1]} : vector<64x32xf32> to vector<16x32xf32>
    %102 = arith.maximumf %100, %101 : vector<16x32xf32>
    %103 = vector.extract_strided_slice %97 {offsets = [48, 0], sizes = [16, 32], strides = [1, 1]} : vector<64x32xf32> to vector<16x32xf32>
    %104 = arith.maximumf %102, %103 : vector<16x32xf32>
    %c0_43 = arith.constant 0 : index
    %c0_44 = arith.constant 0 : index
    %105 = vector.load %arg11[%c0_43, %c0_44] : memref<32x32xf32, #tpu.memory_space<vmem>>, vector<32x32xf32>
    %cst_45 = arith.constant dense<0.000000e+00> : vector<16x32xf32>
    %106 = tpu.matmul %104, %105, %cst_45 {dimension_numbers = #tpu.dot_dimension_numbers<[1], [0], [0], [1], [0, 0, 1, 1], [], []>} : vector<16x32xf32>, vector<32x32xf32>, vector<16x32xf32> -> vector<16x32xf32>
    %c0_46 = arith.constant 0 : index
    %c0_47 = arith.constant 0 : index
    %107 = vector.load %arg12[%c0_46, %c0_47] : memref<8x32xf32, #tpu.memory_space<vmem>>, vector<8x32xf32>
    %cst_48 = arith.constant dense<0.000000e+00> : vector<16x32xf32>
    %108 = tpu.matmul %8, %107, %cst_48 {dimension_numbers = #tpu.dot_dimension_numbers<[1], [0], [0], [1], [0, 0, 1, 1], [], []>} : vector<16x8xf32>, vector<8x32xf32>, vector<16x32xf32> -> vector<16x32xf32>
    %109 = arith.addf %106, %108 : vector<16x32xf32>
    %c0_49 = arith.constant 0 : index
    %c0_50 = arith.constant 0 : index
    %110 = vector.load %arg13[%c0_49, %c0_50] : memref<1x32xf32, #tpu.memory_space<vmem>>, vector<1x32xf32>
    %111 = vector.broadcast %110 : vector<1x32xf32> to vector<16x32xf32>
    %112 = arith.addf %109, %111 : vector<16x32xf32>
    %cst_51 = arith.constant 0.000000e+00 : f32
    %113 = vector.broadcast %cst_51 : f32 to vector<16x32xf32>
    %114 = arith.maximumf %112, %113 : vector<16x32xf32>
    %c0_52 = arith.constant 0 : index
    %c0_53 = arith.constant 0 : index
    %c0_54 = arith.constant 0 : index
    %115 = vector.load %arg14[%c0_52, %c0_53, %c0_54] : memref<1x16x32xf32, #tpu.memory_space<vmem>>, vector<1x16x32xf32>
    %116 = vector.shape_cast %115 : vector<1x16x32xf32> to vector<16x32xf32>
    %117 = vector.shape_cast %114 : vector<16x32xf32> to vector<1x16x32xf32>
    tpu.vector_store %arg14[%c0_52, %c0_53, %c0_54], %117 {strides = array<i32>} : memref<1x16x32xf32, #tpu.memory_space<vmem>>, vector<1x16x32xf32>,
    return
  }
  func.func @transform_0(%arg0: i32, %arg1: i32) -> (i32, i32, i32) {
    %c0_i32 = arith.constant 0 : i32
    %c0_i32_0 = arith.constant 0 : i32
    return %arg0, %arg1, %c0_i32 : i32, i32, i32
  }
  func.func @transform_1(%arg0: i32, %arg1: i32) -> (i32, i32, i32) {
    %c0_i32 = arith.constant 0 : i32
    %c0_i32_0 = arith.constant 0 : i32
    %c0_i32_1 = arith.constant 0 : i32
    return %arg0, %c0_i32, %c0_i32_0 : i32, i32, i32
  }
  func.func @transform_2(%arg0: i32, %arg1: i32) -> (i32, i32, i32) {
    %c0_i32 = arith.constant 0 : i32
    %c0_i32_0 = arith.constant 0 : i32
    return %arg0, %arg1, %c0_i32 : i32, i32, i32
  }
  func.func @transform_3(%arg0: i32, %arg1: i32) -> (i32, i32, i32) {
    %c0_i32 = arith.constant 0 : i32
    %c0_i32_0 = arith.constant 0 : i32
    %c0_i32_1 = arith.constant 0 : i32
    return %arg0, %c0_i32, %c0_i32_0 : i32, i32, i32
  }
  func.func @transform_4(%arg0: i32, %arg1: i32) -> (i32, i32) {
    %c0_i32 = arith.constant 0 : i32
    %c0_i32_0 = arith.constant 0 : i32
    %c0_i32_1 = arith.constant 0 : i32
    return %c0_i32, %c0_i32_0 : i32, i32
  }
  func.func @transform_5(%arg0: i32, %arg1: i32) -> (i32, i32) {
    %c0_i32 = arith.constant 0 : i32
    %c0_i32_0 = arith.constant 0 : i32
    %c0_i32_1 = arith.constant 0 : i32
    return %c0_i32, %c0_i32_0 : i32, i32
  }
  func.func @transform_6(%arg0: i32, %arg1: i32) -> (i32, i32) {
    %c0_i32 = arith.constant 0 : i32
    %c0_i32_0 = arith.constant 0 : i32
    %c0_i32_1 = arith.constant 0 : i32
    return %c0_i32, %c0_i32_0 : i32, i32
  }
  func.func @transform_7(%arg0: i32, %arg1: i32) -> (i32, i32) {
    %c0_i32 = arith.constant 0 : i32
    %c0_i32_0 = arith.constant 0 : i32
    %c0_i32_1 = arith.constant 0 : i32
    return %c0_i32, %c0_i32_0 : i32, i32
  }
  func.func @transform_8(%arg0: i32, %arg1: i32) -> (i32, i32) {
    %c0_i32 = arith.constant 0 : i32
    %c0_i32_0 = arith.constant 0 : i32
    %c0_i32_1 = arith.constant 0 : i32
    return %c0_i32, %c0_i32_0 : i32, i32
  }
  func.func @transform_9(%arg0: i32, %arg1: i32) -> (i32, i32) {
    %c0_i32 = arith.constant 0 : i32
    %c0_i32_0 = arith.constant 0 : i32
    %c0_i32_1 = arith.constant 0 : i32
    return %c0_i32, %c0_i32_0 : i32, i32
  }
  func.func @transform_10(%arg0: i32, %arg1: i32) -> (i32, i32) {
    %c0_i32 = arith.constant 0 : i32
    %c0_i32_0 = arith.constant 0 : i32
    %c0_i32_1 = arith.constant 0 : i32
    return %c0_i32, %c0_i32_0 : i32, i32
  }
  func.func @transform_11(%arg0: i32, %arg1: i32) -> (i32, i32) {
    %c0_i32 = arith.constant 0 : i32
    %c0_i32_0 = arith.constant 0 : i32
    %c0_i32_1 = arith.constant 0 : i32
    return %c0_i32, %c0_i32_0 : i32, i32
  }
  func.func @transform_12(%arg0: i32, %arg1: i32) -> (i32, i32, i32) {
    %c0_i32 = arith.constant 0 : i32
    %c0_i32_0 = arith.constant 0 : i32
    return %arg0, %arg1, %c0_i32 : i32, i32, i32
  }
}

</mosaic_0001>

<bundles_post_ra>
// kernel: tpu_custom_call.1
= control target key start
LH: loop header
LB: loop body
LE: loop exit
PB: predicated region body
PF: predicated region fallthrough
CT: control target
= control target key end

     0   :  { %s5137_s0 = inlined_call_operand.vmem [shape: f32[2,16,3], index: 0, kind: input, shape index: {}]   ;;  %s5138_s1 = inlined_call_operand.vmem [shape: f32[2,32,3], index: 1, kind: input, shape index: {}]   ;;  %s5139_s2 = inlined_call_operand.vmem [shape: f32[2,16,8], index: 2, kind: input, shape index: {}]   ;;  %s5140_s3 = inlined_call_operand.vmem [shape: f32[2,32,16], index: 3, kind: input, shape index: {}]   ;;  %s5141_s4 = inlined_call_operand.vmem [shape: f32[16,32], index: 4, kind: input, shape index: {}]   ;;  %s5142_s5 = inlined_call_operand.vmem [shape: f32[3,32], index: 5, kind: input, shape index: {}]   ;;  %s5143_s6 = inlined_call_operand.vmem [shape: f32[1,32], index: 6, kind: input, shape index: {}]   ;;  %s5144_s7 = inlined_call_operand.vmem [shape: f32[32,32], index: 7, kind: input, shape index: {}]   ;;  %s5145_s8 = inlined_call_operand.vmem [shape: f32[1,32], index: 8, kind: input, shape index: {}]   ;;  %s5146_s9 = inlined_call_operand.vmem [shape: f32[32,32], index: 9, kind: input, shape index: {}]   ;;  %s5147_s10 = inlined_call_operand.vmem [shape: f32[8,32], index: 10, kind: input, shape index: {}]   ;;  %s5148_s11 = inlined_call_operand.vmem [shape: f32[1,32], index: 11, kind: input, shape index: {}]   ;;  %s5149_s12 = inlined_call_operand.hbm [shape: f32[2,16,32], index: 12, kind: output, shape index: {}]  }
   0x1   :  { %5213 = sst [smem:[#allocation62_spill]] %s5137_s0 }
   0x2   :  { %5214 = sst [smem:[#allocation63_spill]] %s5138_s1 }
   0x3   :  { %17 = vsyncpa [#allocation4], 0 }
   0x4   :  { %19 = vsyncpa [#allocation4 + $0x1], 0  ;;  %s3997_s21 = smov 0   ;;  %s3999_s22 = smov 0  }
   0x5   :  { %s4001_s23 = smov 0   ;;  %s4003_s24 = smov 0  }
   0x6   :  { %s4005_s25 = smov 0   ;;  %s4007_s26 = smov 0  }
   0x7 LB: > { %s3522_s27 = sadd.s32 4294967295, %s3925_s26   ;;  %s3523_s28 = sadd.s32 4294967294, %s3925_s26   ;;  %s3925_s26 = sphi %s4007_s26, %s25_s26   ;;  %s3921_s25 = sphi %s4005_s25, %s5375_s25   ;;  %s3917_s24 = sphi %s4003_s24, %s5374_s24   ;;  %s3913_s23 = sphi %s4001_s23, %s5373_s23   ;;  %s3909_s22 = sphi %s3999_s22, %s5372_s22   ;;  %s3905_s21 = sphi %s3997_s21, %s5371_s21  }
   0x8   : > { %s37_s29 = sadd.s32 1, %s3921_s25  ;;  %s322_s30 = sadd.s32 1, %s3913_s23 }
   0x9   : > { %p39_p0 = scmp.ge.s32.totalorder %s37_s29, 2  ;;  %p332_p1 = scmp.ne.s32.totalorder %s3913_s23, %s3909_s22 }
   0xa   : > { %p333_p2 = scmp.eq.s32.totalorder %s3522_s27, 1  ;;  %p338_p3 = scmp.ne.s32.totalorder %s3909_s22, %s3905_s21 }
   0xb   : > { %s5377_s29 = smov (%p39_p0, %s37_s29), 0  ;;  %p339_p5 = scmp.eq.s32.totalorder %s3523_s28, 1 }
   0xc   : > { %5215 = sst [smem:[#allocation6_spill]] %s5377_s29  ;;  %p4037_p4 = por %p333_p2, %p332_p1 }
   0xd   : > { %s317_s14 = ssub.s32 %s3921_s25, %s5377_s29  ;;  %p3526_p6 = scmp.ge.s32.totalorder %s3925_s26, 1 }
   0xe   : > { %p320_p7 = scmp.eq.s32.totalorder %s317_s14, 0  ;;  %p4044_p8 = por %p339_p5, %p338_p3 }
   0xf   : > { %p423_p9 = scmp.lt.s32.totalorder %s3925_s26, 3 }
  0x10   : > { %s4050_s16 = scalar_select %p320_p7, %s3913_s23, %s322_s30  }
  0x11   : > { %p424_p10 = pnand %p3526_p6, %p423_p9 }
  0x13   : > { %427 = sbr.rel (%p424_p10) target bundleno = 3305 (0xce9), region = 68 }
  0x1a   : > { %p489_p11 = scmp.lt.s32.totalorder %s3917_s24, 1  ;;  %vm534_vm0 = vcmask 23552   ;;  %s5218_s1 = sld [smem:[#allocation63_spill]]  ;;  %v861_v17 = vlaneseq  ;;  %v3927_v24 = vmov 0   ;;  %vm1560_vm2 = vcmask 130112  }
  0x1b   : > { %vm4067_vm1 = vmpackc.low %vm534_vm0, %vm534_vm0  ;;  %s5221_s0 = sld [smem:[#allocation62_spill]]  ;;  %3844 = vset.pattern.permute.xlu0 %v3927_v24  ;;  %3843 = vset.pattern.permute.xlu1 %v3927_v24  ;;  %vm1567_vm3 = vcmask 195712   ;;  %vm1574_vm4 = vcmask 261312   ;;  %vm1861_vm5 = vcmask 1041409   ;;  %vm1863_vm6 = vcmask 1042434  }
  0x1c   : > { %s4054_s17 = scalar_select %p489_p11, %s3917_s24, 1  ;;  %v4098_v18 = vand.u32 127, %v861_v17  ;;  %v4104_v19 = vshrl.u32 %v861_v17, 7  ;;  %vm1865_vm7 = vcmask 1043459   ;;  %vm1867_vm8 = vcmask 1044484  }
  0x1d   : > { %vm1869_vm9 = vcmask 1045509   ;;  %vm1871_vm10 = vcmask 1046534   ;;  %vm5211_vm11 = vcmask 1047559   ;;  %vm5210_vm12 = vcmask 261120  }
  0x1e   : > { %s3591_s18 = sshll.u32 %s4054_s17, 5  ;;  %s5212_s19 = sshll.u32 %s4054_s17, 4  ;;  %5222 = vst [vmem:[#allocation7_spill] sm:$0xff] %v4098_v18  ;;  %v4107_v20 = vsub.s32 0, %v4104_v19  ;;  %v4111_v26 = vsub.s32 1, %v4104_v19  ;;  %v4115_v28 = vsub.s32 2, %v4104_v19 }
  0x1f   : > { %v4119_v30 = vsub.s32 3, %v4104_v19  ;;  %v4123_v32 = vsub.s32 4, %v4104_v19  ;;  %v4127_v34 = vsub.s32 5, %v4104_v19  ;;  %v4131_v36 = vsub.s32 6, %v4104_v19 }
  0x20   : > { %s4063_s28 = scalar_lea.vmem %s5218_s1, %s3591_s18  ;;  %v4135_v38 = vsub.s32 7, %v4104_v19  ;;  %s517_s1 = scalar_lea.vmem %s5140_s3, %s3591_s18 }
  0x21   : > { %s4076_s29 = scalar_lea.vmem %s5221_s0, %s5212_s19  ;;  %v741_v1 = vld [vmem:[%s4063_s28] sm:$0xff]  ;;  %v742_v2 = vld [vmem:[%s4063_s28 + $0x8] sm:$0xff]  ;;  %v743_v3 = vld [vmem:[%s4063_s28 + $0x10] sm:$0xff]  ;;  %5223 = vst [vmem:[#allocation8_spill] sm:$0xff] %v4127_v34  ;;  %s5365_s0 = sshll.u32 %s4054_s17, 4 }
  0x22   : > { %v3742_v4 = vpack.c.bf16 %v742_v2, %v741_v1  ;;  %v744_v5 = vld [vmem:[%s4063_s28 + $0x18] sm:$0xff]  ;;  %v739_v6 = vld [vmem:[%s4076_s29] sm:$0xff]  ;;  %v749_v7 = vmul.f32 %v743_v3, %v743_v3  ;;  %v747_v8 = vmul.f32 %v741_v1, %v741_v1  ;;  %v748_v11 = vmul.f32 %v742_v2, %v742_v2  ;;  %v740_v16 = vld [vmem:[%s4076_s29 + $0x8] sm:$0xff]  ;;  %5224 = vst [vmem:[#allocation9_spill] sm:$0xff] %v4131_v36  ;;  %s511_s18 = scalar_lea.vmem %s5139_s2, %s5365_s0  ;;  %s485_s17 = sand.u32 1, %s3909_s22  }
  0x23   : > { %v3748_v9 = vpack.c.bf16 %v744_v5, %v743_v3  ;;  %3674 = vmatprep.mubr.msk.f32.mxu1 %vm534_vm0, %v739_v6  ;;  %v750_v10 = vmul.f32 %v744_v5, %v744_v5  ;;  %5225 = vst [vmem:[#allocation10_spill] sm:$0xff] %v4135_v38  ;;  %s3527_s20 = sshll.u32 %s485_s17, 4 }
  0x24   : > { %3744 = vmatprep.subr.msk.bf16.mxu1 %vm4067_vm1, %v3742_v4  ;;  %v758_v12 = vsel %vm534_vm0, %v749_v7, 0.0  ;;  %v752_v13 = vsel %vm534_vm0, %v747_v8, 0.0  ;;  %v755_v15 = vsel %vm534_vm0, %v748_v11, 0.0 }
  0x25   : > { %3747 = vmatpush3.bf16.xpose.msk.msra.mxu1 %vm4067_vm1, %v3742_v4  ;;  %759 = vadd.xlane.f32.xlu1 %v758_v12  ;;  %v761_v14 = vsel %vm534_vm0, %v750_v10, 0.0 }
  0x26   : > { %3750 = vmatprep.subr.msk.bf16.mxu1 %vm4067_vm1, %v3748_v9  ;;  %753 = vadd.xlane.f32.xlu0 %v752_v13 }
  0x29   : > { %762 = vadd.xlane.f32.xlu1 %v761_v14 }
  0x2a   : > { %756 = vadd.xlane.f32.xlu0 %v755_v15 }
  0x2d   : > { %3753 = vmatpush3.bf16.xpose.msk.msra.mxu1 %vm4067_vm1, %v3748_v9 }
  0x34   : > { %3675 = vmatmul.mubr.msk.f32.vlgmr.msra.gmra.mrb[0].mxu1 %vm534_vm0, %v740_v16 }
  0x3a   : > { %2042 = vbcast.lane.b32.xlu1 %v4098_v18, 264 }
  0x3e   : > { %2046 = vbcast.lane.b32.xlu1 %v4098_v18, 272 }
  0x40   : > { %2038 = vbcast.lane.b32.xlu0 %v4098_v18, 256 }
  0x44   : > { %2050 = vbcast.lane.b32.xlu0 %v4098_v18, 280 }
  0xb2   : > { %v4143_v46 = vpop.xlane.xlu1 %759 }
  0xb3   : > { %v4145_v47 = vpop.xlane.xlu0 %753 }
  0xb6   : > { %v4148_v49 = vpop.xlane.xlu1 %762 }
  0xb7   : > { %v4150_v50 = vpop.xlane.xlu0 %756 }
  0xba   : > { %v4153_v52 = vpop.permute.xlu1 %2042 }
  0xbb   : > { %v4155_v53 = vpop.permute.xlu0 %2038 }
  0xbe   : > { %v4157_v54 = vpop.permute.xlu1 %2046 }
  0xbf   : > { %v4159_v55 = vpop.permute.xlu0 %2050 }
 0x107   : > { %v3676_v21 = vpop.f32.mrb[0].mxu1 }
 0x108   : > { %v858_v22 = vmul.f32 2.0, %v3676_v21  ;;  %v848_v23 = vpop.f32.mrb[1].mxu1 }
 0x109   : > { %v857_v40 = vmul.f32 2.0, %v848_v23 }
 0x10a   : > { %v1016_v25 = vrot.slane %v858_v22, %v4107_v20  ;;  %v1035_v27 = vrot.slane %v858_v22, %v4111_v26  ;;  %v1054_v29 = vrot.slane %v858_v22, %v4115_v28  ;;  %v1073_v31 = vrot.slane %v858_v22, %v4119_v30 }
 0x10b   : > { %v1092_v33 = vrot.slane %v858_v22, %v4123_v32  ;;  %v1111_v35 = vrot.slane %v858_v22, %v4127_v34  ;;  %v1130_v37 = vrot.slane %v858_v22, %v4131_v36  ;;  %v1149_v39 = vrot.slane %v858_v22, %v4135_v38 }
 0x10c   : > { %1022 = vbcast.lane.b32.xlu1 %v1016_v25, 264  ;;  %1018 = vbcast.lane.b32.xlu0 %v1016_v25, 256  ;;  %v864_v41 = vrot.slane %v857_v40, %v4107_v20  ;;  %v902_v42 = vrot.slane %v857_v40, %v4115_v28  ;;  %v883_v43 = vrot.slane %v857_v40, %v4111_v26 }
 0x10d   : > { %v921_v44 = vrot.slane %v857_v40, %v4119_v30  ;;  %v940_v45 = vrot.slane %v857_v40, %v4123_v32  ;;  %v959_v48 = vrot.slane %v857_v40, %v4127_v34  ;;  %v978_v51 = vrot.slane %v857_v40, %v4131_v36 }
 0x10e   : > { %v997_v56 = vrot.slane %v857_v40, %v4135_v38 }
 0x110   : > { %1041 = vbcast.lane.b32.xlu1 %v1035_v27, 264  ;;  %1037 = vbcast.lane.b32.xlu0 %v1035_v27, 256 }
 0x114   : > { %1026 = vbcast.lane.b32.xlu1 %v1016_v25, 272  ;;  %1045 = vbcast.lane.b32.xlu0 %v1035_v27, 272 }
 0x118   : > { %1056 = vbcast.lane.b32.xlu1 %v1054_v29, 256  ;;  %1060 = vbcast.lane.b32.xlu0 %v1054_v29, 264 }
 0x11c   : > { %1030 = vbcast.lane.b32.xlu1 %v1016_v25, 280  ;;  %1049 = vbcast.lane.b32.xlu0 %v1035_v27, 280 }
 0x120   : > { %1064 = vbcast.lane.b32.xlu1 %v1054_v29, 272  ;;  %1075 = vbcast.lane.b32.xlu0 %v1073_v31, 256 }
 0x124   : > { %1079 = vbcast.lane.b32.xlu1 %v1073_v31, 264  ;;  %1068 = vbcast.lane.b32.xlu0 %v1054_v29, 280 }
 0x128   : > { %1083 = vbcast.lane.b32.xlu1 %v1073_v31, 272  ;;  %1094 = vbcast.lane.b32.xlu0 %v1092_v33, 256 }
 0x12c   : > { %1098 = vbcast.lane.b32.xlu1 %v1092_v33, 264  ;;  %1087 = vbcast.lane.b32.xlu0 %v1073_v31, 280 }
 0x130   : > { %1102 = vbcast.lane.b32.xlu1 %v1092_v33, 272  ;;  %1113 = vbcast.lane.b32.xlu0 %v1111_v35, 256 }
 0x134   : > { %1117 = vbcast.lane.b32.xlu1 %v1111_v35, 264  ;;  %1106 = vbcast.lane.b32.xlu0 %v1092_v33, 280 }
 0x138   : > { %1121 = vbcast.lane.b32.xlu1 %v1111_v35, 272  ;;  %1132 = vbcast.lane.b32.xlu0 %v1130_v37, 256 }
 0x13c   : > { %1136 = vbcast.lane.b32.xlu1 %v1130_v37, 264  ;;  %1125 = vbcast.lane.b32.xlu0 %v1111_v35, 280 }
 0x140   : > { %1140 = vbcast.lane.b32.xlu1 %v1130_v37, 272  ;;  %1151 = vbcast.lane.b32.xlu0 %v1149_v39, 256 }
 0x144   : > { %1155 = vbcast.lane.b32.xlu1 %v1149_v39, 264  ;;  %1159 = vbcast.lane.b32.xlu0 %v1149_v39, 272 }
 0x148   : > { %1144 = vbcast.lane.b32.xlu1 %v1130_v37, 280  ;;  %866 = vbcast.lane.b32.xlu0 %v864_v41, 256 }
 0x14c   : > { %1163 = vbcast.lane.b32.xlu1 %v1149_v39, 280  ;;  %874 = vbcast.lane.b32.xlu0 %v864_v41, 272 }
 0x150   : > { %870 = vbcast.lane.b32.xlu1 %v864_v41, 264  ;;  %904 = vbcast.lane.b32.xlu0 %v902_v42, 256 }
 0x154   : > { %885 = vbcast.lane.b32.xlu1 %v883_v43, 256  ;;  %878 = vbcast.lane.b32.xlu0 %v864_v41, 280 }
 0x158   : > { %889 = vbcast.lane.b32.xlu1 %v883_v43, 264  ;;  %912 = vbcast.lane.b32.xlu0 %v902_v42, 272 }
 0x15c   : > { %893 = vbcast.lane.b32.xlu1 %v883_v43, 272  ;;  %927 = vbcast.lane.b32.xlu0 %v921_v44, 264 }
 0x160   : > { %908 = vbcast.lane.b32.xlu1 %v902_v42, 264  ;;  %931 = vbcast.lane.b32.xlu0 %v921_v44, 272 }
 0x164   : > { %897 = vbcast.lane.b32.xlu1 %v883_v43, 280  ;;  %946 = vbcast.lane.b32.xlu0 %v940_v45, 264 }
 0x168   : > { %923 = vbcast.lane.b32.xlu1 %v921_v44, 256  ;;  %935 = vbcast.lane.b32.xlu0 %v921_v44, 280 }
 0x16c   : > { %916 = vbcast.lane.b32.xlu1 %v902_v42, 280  ;;  %961 = vbcast.lane.b32.xlu0 %v959_v48, 256 }
 0x170   : > { %942 = vbcast.lane.b32.xlu1 %v940_v45, 256  ;;  %954 = vbcast.lane.b32.xlu0 %v940_v45, 280 }
 0x174   : > { %950 = vbcast.lane.b32.xlu1 %v940_v45, 272  ;;  %980 = vbcast.lane.b32.xlu0 %v978_v51, 256 }
 0x178   : > { %965 = vbcast.lane.b32.xlu1 %v959_v48, 264  ;;  %973 = vbcast.lane.b32.xlu0 %v959_v48, 280 }
 0x17c   : > { %969 = vbcast.lane.b32.xlu1 %v959_v48, 272  ;;  %999 = vbcast.lane.b32.xlu0 %v997_v56, 256 }
 0x17e   : > { %v1023_v57 = vpop.permute.xlu1 %1022  ;;  %v1019_v58 = vpop.permute.xlu0 %1018 }
 0x17f   : > { %v4163_v61 = vsub.f32 %v4150_v50, %v1023_v57  ;;  %v4171_v3 = vsub.f32 %v4145_v47, %v1019_v58 }
 0x180   : > { %984 = vbcast.lane.b32.xlu1 %v978_v51, 264  ;;  %992 = vbcast.lane.b32.xlu0 %v978_v51, 280 }
 0x182   : > { %v1042_v59 = vpop.permute.xlu1 %1041  ;;  %v1038_v60 = vpop.permute.xlu0 %1037 }
 0x183   : > { %v4167_v0 = vsub.f32 %v4150_v50, %v1042_v59  ;;  %v4179_v7 = vsub.f32 %v4145_v47, %v1038_v60 }
 0x184   : > { %988 = vbcast.lane.b32.xlu1 %v978_v51, 272  ;;  %1011 = vbcast.lane.b32.xlu0 %v997_v56, 280 }
 0x186   : > { %v1027_v62 = vpop.permute.xlu1 %1026  ;;  %v1046_v63 = vpop.permute.xlu0 %1045 }
 0x187   : > { %v4174_v4 = vsub.f32 %v4143_v46, %v1027_v62  ;;  %v4187_v11 = vsub.f32 %v4143_v46, %v1046_v63 }
 0x188   : > { %1003 = vbcast.lane.b32.xlu1 %v997_v56, 264  ;;  %1459 = vperm.xlu0 %3844, %v4163_v61  }
 0x18a   : > { %v1057_v1 = vpop.permute.xlu1 %1056  ;;  %v1061_v2 = vpop.permute.xlu0 %1060 }
 0x18b   : > { %v4182_v8 = vsub.f32 %v4145_v47, %v1057_v1  ;;  %v4195_v15 = vsub.f32 %v4150_v50, %v1061_v2 }
 0x18c   : > { %1007 = vbcast.lane.b32.xlu1 %v997_v56, 272  ;;  %1471 = vperm.xlu0 %3844, %v4167_v0  }
 0x18e   : > { %v1031_v5 = vpop.permute.xlu1 %1030  ;;  %v1050_v6 = vpop.permute.xlu0 %1049 }
 0x18f   : > { %v4190_v12 = vsub.f32 %v4148_v49, %v1031_v5  ;;  %v4203_v22 = vsub.f32 %v4148_v49, %v1050_v6 }
 0x190   : > { %1456 = vperm.xlu1 %3843, %v4171_v3   ;;  %1462 = vperm.xlu0 %3844, %v4174_v4  }
 0x192   : > { %v1065_v9 = vpop.permute.xlu1 %1064  ;;  %v1076_v10 = vpop.permute.xlu0 %1075 }
 0x193   : > { %v4198_v16 = vsub.f32 %v4143_v46, %v1065_v9  ;;  %v4211_v27 = vsub.f32 %v4145_v47, %v1076_v10 }
 0x194   : > { %1468 = vperm.xlu1 %3843, %v4179_v7   ;;  %1480 = vperm.xlu0 %3844, %v4182_v8  }
 0x196   : > { %v1080_v13 = vpop.permute.xlu1 %1079  ;;  %v1069_v14 = vpop.permute.xlu0 %1068 }
 0x197   : > { %v4206_v23 = vsub.f32 %v4150_v50, %v1080_v13  ;;  %v4219_v35 = vsub.f32 %v4148_v49, %v1069_v14 }
 0x198   : > { %1474 = vperm.xlu1 %3843, %v4187_v11   ;;  %1465 = vperm.xlu0 %3844, %v4190_v12  }
 0x19a   : > { %v1084_v17 = vpop.permute.xlu1 %1083  ;;  %v1095_v21 = vpop.permute.xlu0 %1094 }
 0x19b   : > { %v4214_v29 = vsub.f32 %v4143_v46, %v1084_v17  ;;  %v4227_v41 = vsub.f32 %v4145_v47, %v1095_v21 }
 0x19c   : > { %1483 = vperm.xlu1 %3843, %v4195_v15   ;;  %1486 = vperm.xlu0 %3844, %v4198_v16  }
 0x19d   : > { %5226 = vst [vmem:[#allocation11_spill] sm:$0xff] %v4214_v29  ;;  %5228 = vst [vmem:[#allocation13_spill] sm:$0xff] %v4227_v41 }
 0x19e   : > { %v1099_v24 = vpop.permute.xlu1 %1098  ;;  %v1088_v25 = vpop.permute.xlu0 %1087 }
 0x19f   : > { %v4222_v37 = vsub.f32 %v4150_v50, %v1099_v24  ;;  %v4235_v45 = vsub.f32 %v4148_v49, %v1088_v25 }
 0x1a0   : > { %1477 = vperm.xlu1 %3843, %v4203_v22   ;;  %1495 = vperm.xlu0 %3844, %v4206_v23  }
 0x1a1   : > { %5227 = vst [vmem:[#allocation12_spill] sm:$0xff] %v4222_v37  ;;  %5230 = vst [vmem:[#allocation15_spill] sm:$0xff] %v4235_v45 }
 0x1a2   : > { %v1103_v31 = vpop.permute.xlu1 %1102  ;;  %v1114_v33 = vpop.permute.xlu0 %1113 }
 0x1a3   : > { %v4230_v42 = vsub.f32 %v4143_v46, %v1103_v31  ;;  %v4243_v57 = vsub.f32 %v4145_v47, %v1114_v33 }
 0x1a4   : > { %1492 = vperm.xlu1 %3843, %v4211_v27   ;;  %1498 = vperm.xlu0 %3844, %v4214_v29  }
 0x1a5   : > { %5229 = vst [vmem:[#allocation14_spill] sm:$0xff] %v4230_v42  ;;  %5232 = vst [vmem:[#allocation17_spill] sm:$0xff] %v4243_v57 }
 0x1a6   : > { %v1118_v39 = vpop.permute.xlu1 %1117  ;;  %v1107_v40 = vpop.permute.xlu0 %1106 }
 0x1a7   : > { %v4238_v48 = vsub.f32 %v4150_v50, %v1118_v39  ;;  %v4251_v62 = vsub.f32 %v4148_v49, %v1107_v40 }
 0x1a8   : > { %1489 = vperm.xlu1 %3843, %v4219_v35   ;;  %1507 = vperm.xlu0 %3844, %v4222_v37  }
 0x1a9   : > { %5231 = vst [vmem:[#allocation16_spill] sm:$0xff] %v4238_v48  ;;  %5234 = vst [vmem:[#allocation19_spill] sm:$0xff] %v4251_v62 }
 0x1aa   : > { %v1122_v43 = vpop.permute.xlu1 %1121  ;;  %v1133_v44 = vpop.permute.xlu0 %1132 }
 0x1ab   : > { %v4246_v58 = vsub.f32 %v4143_v46, %v1122_v43  ;;  %v4259_v5 = vsub.f32 %v4145_v47, %v1133_v44 }
 0x1ac   : > { %1504 = vperm.xlu1 %3843, %v4227_v41   ;;  %1510 = vperm.xlu0 %3844, %v4230_v42  }
 0x1ad   : > { %5233 = vst [vmem:[#allocation18_spill] sm:$0xff] %v4246_v58  ;;  %5236 = vst [vmem:[#allocation21_spill] sm:$0xff] %v4259_v5 }
 0x1ae   : > { %v1137_v51 = vpop.permute.xlu1 %1136  ;;  %v1126_v56 = vpop.permute.xlu0 %1125 }
 0x1af   : > { %v4254_v63 = vsub.f32 %v4150_v50, %v1137_v51  ;;  %v4267_v13 = vsub.f32 %v4148_v49, %v1126_v56 }
 0x1b0   : > { %1501 = vperm.xlu1 %3843, %v4235_v45   ;;  %1519 = vperm.xlu0 %3844, %v4238_v48  }
 0x1b1   : > { %5235 = vst [vmem:[#allocation20_spill] sm:$0xff] %v4254_v63  ;;  %5238 = vst [vmem:[#allocation23_spill] sm:$0xff] %v4267_v13 }
 0x1b2   : > { %v1141_v59 = vpop.permute.xlu1 %1140  ;;  %v1152_v60 = vpop.permute.xlu0 %1151 }
 0x1b3   : > { %v4262_v6 = vsub.f32 %v4143_v46, %v1141_v59  ;;  %v4275_v24 = vsub.f32 %v4145_v47, %v1152_v60 }
 0x1b4   : > { %1516 = vperm.xlu1 %3843, %v4243_v57   ;;  %1522 = vperm.xlu0 %3844, %v4246_v58  }
 0x1b5   : > { %5237 = vst [vmem:[#allocation22_spill] sm:$0xff] %v4262_v6  ;;  %5240 = vst [vmem:[#allocation25_spill] sm:$0xff] %v4275_v24 }
 0x1b6   : > { %v1156_v1 = vpop.permute.xlu1 %1155  ;;  %v1160_v2 = vpop.permute.xlu0 %1159 }
 0x1b7   : > { %v4270_v14 = vsub.f32 %v4150_v50, %v1156_v1  ;;  %v4283_v39 = vsub.f32 %v4143_v46, %v1160_v2 }
 0x1b8   : > { %1513 = vperm.xlu1 %3843, %v4251_v62   ;;  %1531 = vperm.xlu0 %3844, %v4254_v63  }
 0x1b9   : > { %5239 = vst [vmem:[#allocation24_spill] sm:$0xff] %v4270_v14  ;;  %5242 = vst [vmem:[#allocation27_spill] sm:$0xff] %v4283_v39 }
 0x1ba   : > { %v1145_v9 = vpop.permute.xlu1 %1144  ;;  %v867_v10 = vpop.permute.xlu0 %866 }
 0x1bb   : > { %v4278_v25 = vsub.f32 %v4148_v49, %v1145_v9  ;;  %v4291_v51 = vsub.f32 %v4145_v47, %v867_v10 }
 0x1bc   : > { %1528 = vperm.xlu1 %3843, %v4259_v5   ;;  %1534 = vperm.xlu0 %3844, %v4262_v6   ;;  %v1569_v5 = vadd.s32 4294967272, %v4098_v18 }
 0x1bd   : > { %5241 = vst [vmem:[#allocation26_spill] sm:$0xff] %v4278_v25  ;;  %5244 = vst [vmem:[#allocation29_spill] sm:$0xff] %v4291_v51 }
 0x1be   : > { %v1164_v17 = vpop.permute.xlu1 %1163  ;;  %v875_v21 = vpop.permute.xlu0 %874 }
 0x1bf   : > { %v4286_v40 = vsub.f32 %v4148_v49, %v1164_v17  ;;  %v4307_v10 = vsub.f32 %v4143_v46, %v875_v21 }
 0x1c0   : > { %1525 = vperm.xlu1 %3843, %v4267_v13   ;;  %1543 = vperm.xlu0 %3844, %v4270_v14   ;;  %v1562_v14 = vadd.s32 4294967280, %v4098_v18 }
 0x1c1   : > { %5243 = vst [vmem:[#allocation28_spill] sm:$0xff] %v4286_v40  ;;  %5248 = vst [vmem:[#allocation33_spill] sm:$0xff] %v4307_v10 }
 0x1c2   : > { %v871_v31 = vpop.permute.xlu1 %870  ;;  %v905_v33 = vpop.permute.xlu0 %904  ;;  %v4442_v63 = vsub.s32 %v1562_v14, %v4104_v19 }
 0x1c3   : > { %v4294_v56 = vsub.f32 %v4150_v50, %v871_v31 }
 0x1c4   : > { %1540 = vperm.xlu1 %3843, %v4275_v24   ;;  %1537 = vperm.xlu0 %3844, %v4278_v25   ;;  %v1555_v25 = vadd.s32 4294967288, %v4098_v18  ;;  %v4434_v24 = vsub.s32 %v4098_v18, %v4104_v19 }
 0x1c5   : > { %5245 = vst [vmem:[#allocation30_spill] sm:$0xff] %v4294_v56 }
 0x1c6   : > { %v886_v43 = vpop.permute.xlu1 %885  ;;  %v879_v44 = vpop.permute.xlu0 %878  ;;  %v4439_v13 = vsub.s32 %v1555_v25, %v4104_v19  ;;  %v4452_v25 = vsub.s32 %v1569_v5, %v4104_v19 }
 0x1c7   : > { %v4299_v1 = vsub.f32 %v4145_v47, %v886_v43  ;;  %v4315_v43 = vsub.f32 %v4145_v47, %v905_v33  ;;  %v4323_v21 = vsub.f32 %v4148_v49, %v879_v44 }
 0x1c8   : > { %1546 = vperm.xlu1 %3843, %v4283_v39   ;;  %1549 = vperm.xlu0 %3844, %v4286_v40  }
 0x1c9   : > { %5246 = vst [vmem:[#allocation31_spill] sm:$0xff] %v4299_v1  ;;  %5250 = vst [vmem:[#allocation35_spill] sm:$0xff] %v4315_v43 }
 0x1ca   : > { %v890_v59 = vpop.permute.xlu1 %889  ;;  %v913_v60 = vpop.permute.xlu0 %912  ;;  %5252 = vst [vmem:[#allocation37_spill] sm:$0xff] %v4323_v21 }
 0x1cb   : > { %v4302_v2 = vsub.f32 %v4150_v50, %v890_v59  ;;  %v4331_v33 = vsub.f32 %v4143_v46, %v913_v60 }
 0x1cc   : > { %1363 = vperm.xlu1 %3843, %v4294_v56   ;;  %1360 = vperm.xlu0 %3844, %v4291_v51  }
 0x1cd   : > { %5247 = vst [vmem:[#allocation32_spill] sm:$0xff] %v4302_v2  ;;  %5254 = vst [vmem:[#allocation39_spill] sm:$0xff] %v4331_v33 }
 0x1ce   : > { %v894_v9 = vpop.permute.xlu1 %893  ;;  %v928_v17 = vpop.permute.xlu0 %927 }
 0x1cf   : > { %v4310_v31 = vsub.f32 %v4143_v46, %v894_v9  ;;  %v4339_v44 = vsub.f32 %v4150_v50, %v928_v17 }
 0x1d0   : > { %1372 = vperm.xlu1 %3843, %v4299_v1   ;;  %1375 = vperm.xlu0 %3844, %v4302_v2  }
 0x1d1   : > { %5249 = vst [vmem:[#allocation34_spill] sm:$0xff] %v4310_v31  ;;  %5256 = vst [vmem:[#allocation41_spill] sm:$0xff] %v4339_v44 }
 0x1d2   : > { %v909_v39 = vpop.permute.xlu1 %908  ;;  %v932_v40 = vpop.permute.xlu0 %931 }
 0x1d3   : > { %v4318_v59 = vsub.f32 %v4150_v50, %v909_v39 }
 0x1d4   : > { %1378 = vperm.xlu0 %3844, %v4310_v31   ;;  %1366 = vperm.xlu1 %3843, %v4307_v10  }
 0x1d5   : > { %5251 = vst [vmem:[#allocation36_spill] sm:$0xff] %v4318_v59 }
 0x1d6   : > { %v898_v1 = vpop.permute.xlu1 %897  ;;  %v947_v2 = vpop.permute.xlu0 %946 }
 0x1d7   : > { %v4326_v9 = vsub.f32 %v4148_v49, %v898_v1  ;;  %v4355_v17 = vsub.f32 %v4150_v50, %v947_v2 }
 0x1d8   : > { %1387 = vperm.xlu0 %3844, %v4318_v59   ;;  %1384 = vperm.xlu1 %3843, %v4315_v43  }
 0x1d9   : > { %5253 = vst [vmem:[#allocation38_spill] sm:$0xff] %v4326_v9  ;;  %5260 = vst [vmem:[#allocation45_spill] sm:$0xff] %v4355_v17 }
 0x1da   : > { %v924_v31 = vpop.permute.xlu1 %923  ;;  %v936_v10 = vpop.permute.xlu0 %935 }
 0x1db   : > { %v4334_v39 = vsub.f32 %v4145_v47, %v924_v31  ;;  %v4347_v31 = vsub.f32 %v4143_v46, %v932_v40  ;;  %v4363_v40 = vsub.f32 %v4148_v49, %v936_v10 }
 0x1dc   : > { %1381 = vperm.xlu0 %3844, %v4326_v9   ;;  %1369 = vperm.xlu1 %3843, %v4323_v21  }
 0x1dd   : > { %5255 = vst [vmem:[#allocation40_spill] sm:$0xff] %v4334_v39  ;;  %5258 = vst [vmem:[#allocation43_spill] sm:$0xff] %v4347_v31 }
 0x1de   : > { %v917_v59 = vpop.permute.xlu1 %916  ;;  %v962_v43 = vpop.permute.xlu0 %961  ;;  %5262 = vst [vmem:[#allocation47_spill] sm:$0xff] %v4363_v40 }
 0x1df   : > { %v4342_v1 = vsub.f32 %v4148_v49, %v917_v59 }
 0x1e0   : > { %1396 = vperm.xlu0 %3844, %v4334_v39   ;;  %1390 = vperm.xlu1 %3843, %v4331_v33  }
 0x1e1   : > { %5257 = vst [vmem:[#allocation42_spill] sm:$0xff] %v4342_v1 }
 0x1e2   : > { %v943_v9 = vpop.permute.xlu1 %942  ;;  %v955_v60 = vpop.permute.xlu0 %954 }
 0x1e3   : > { %v4350_v21 = vsub.f32 %v4145_v47, %v943_v9  ;;  %v4379_v10 = vsub.f32 %v4148_v49, %v955_v60 }
 0x1e4   : > { %1393 = vperm.xlu0 %3844, %v4342_v1   ;;  %1399 = vperm.xlu1 %3843, %v4339_v44  }
 0x1e5   : > { %5259 = vst [vmem:[#allocation44_spill] sm:$0xff] %v4350_v21  ;;  %5266 = vst [vmem:[#allocation51_spill] sm:$0xff] %v4379_v10 }
 0x1e6   : > { %v951_v39 = vpop.permute.xlu1 %950  ;;  %v981_v44 = vpop.permute.xlu0 %980 }
 0x1e7   : > { %v4358_v59 = vsub.f32 %v4143_v46, %v951_v39  ;;  %v4371_v39 = vsub.f32 %v4145_v47, %v962_v43  ;;  %v4387_v43 = vsub.f32 %v4145_v47, %v981_v44 }
 0x1e8   : > { %1408 = vperm.xlu0 %3844, %v4350_v21   ;;  %1402 = vperm.xlu1 %3843, %v4347_v31  }
 0x1e9   : > { %5261 = vst [vmem:[#allocation46_spill] sm:$0xff] %v4358_v59  ;;  %5264 = vst [vmem:[#allocation49_spill] sm:$0xff] %v4371_v39 }
 0x1ea   : > { %v966_v1 = vpop.permute.xlu1 %965  ;;  %v974_v2 = vpop.permute.xlu0 %973  ;;  %5268 = vst [vmem:[#allocation53_spill] sm:$0xff] %v4387_v43 }
 0x1eb   : > { %v4366_v9 = vsub.f32 %v4150_v50, %v966_v1 }
 0x1ec   : > { %1414 = vperm.xlu0 %3844, %v4358_v59   ;;  %1411 = vperm.xlu1 %3843, %v4355_v17  }
 0x1ed   : > { %5263 = vst [vmem:[#allocation48_spill] sm:$0xff] %v4366_v9 }
 0x1ee   : > { %v970_v21 = vpop.permute.xlu1 %969 }
 0x1ef   : > { %v4374_v31 = vsub.f32 %v4143_v46, %v970_v21 }
 0x1f0   : > { %1423 = vperm.xlu0 %3844, %v4366_v9   ;;  %1405 = vperm.xlu1 %3843, %v4363_v40   ;;  %v1000_v40 = vpop.permute.xlu0 %999 }
 0x1f1   : > { %5265 = vst [vmem:[#allocation50_spill] sm:$0xff] %v4374_v31  ;;  %v4403_v44 = vsub.f32 %v4145_v47, %v1000_v40 }
 0x1f2   : > { %v985_v59 = vpop.permute.xlu1 %984 }
 0x1f3   : > { %v4382_v1 = vsub.f32 %v4150_v50, %v985_v59  ;;  %v4395_v59 = vsub.f32 %v4148_v49, %v974_v2  ;;  %5272 = vst [vmem:[#allocation57_spill] sm:$0xff] %v4403_v44 }
 0x1f4   : > { %1426 = vperm.xlu0 %3844, %v4374_v31   ;;  %1420 = vperm.xlu1 %3843, %v4371_v39   ;;  %v993_v60 = vpop.permute.xlu0 %992 }
 0x1f5   : > { %5267 = vst [vmem:[#allocation52_spill] sm:$0xff] %v4382_v1  ;;  %5270 = vst [vmem:[#allocation55_spill] sm:$0xff] %v4395_v59  ;;  %v4411_v2 = vsub.f32 %v4148_v49, %v993_v60 }
 0x1f6   : > { %v989_v9 = vpop.permute.xlu1 %988 }
 0x1f7   : > { %v4390_v21 = vsub.f32 %v4143_v46, %v989_v9  ;;  %5274 = vst [vmem:[#allocation59_spill] sm:$0xff] %v4411_v2 }
 0x1f8   : > { %1435 = vperm.xlu0 %3844, %v4382_v1   ;;  %1417 = vperm.xlu1 %3843, %v4379_v10  }
 0x1f9   : > { %5269 = vst [vmem:[#allocation54_spill] sm:$0xff] %v4390_v21 }
 0x1fa   : > { %v1004_v31 = vpop.permute.xlu1 %1003 }
 0x1fb   : > { %v4398_v39 = vsub.f32 %v4150_v50, %v1004_v31 }
 0x1fc   : > { %1438 = vperm.xlu0 %3844, %v4390_v21   ;;  %1432 = vperm.xlu1 %3843, %v4387_v43   ;;  %v1012_v21 = vpop.permute.xlu0 %1011 }
 0x1fd   : > { %5271 = vst [vmem:[#allocation56_spill] sm:$0xff] %v4398_v39  ;;  %v4415_v31 = vsub.f32 %v4148_v49, %v1012_v21 }
 0x1fe   : > { %v1008_v1 = vpop.permute.xlu1 %1007 }
 0x1ff   : > { %v4406_v9 = vsub.f32 %v4143_v46, %v1008_v1  ;;  %5275 = vst [vmem:[#allocation60_spill] sm:$0xff] %v4415_v31 }
 0x200   : > { %1447 = vperm.xlu0 %3844, %v4398_v39   ;;  %1429 = vperm.xlu1 %3843, %v4395_v59  }
 0x201   : > { %5273 = vst [vmem:[#allocation58_spill] sm:$0xff] %v4406_v9 }
 0x204   : > { %1450 = vperm.xlu0 %3844, %v4406_v9   ;;  %1444 = vperm.xlu1 %3843, %v4403_v44  }
 0x207   : > { %v1460_v50 = vpop.permute.xlu0 %1459 }
 0x208   : > { %1441 = vperm.xlu1 %3843, %v4411_v2   ;;  %v1716_v57 = vrot.slane %v1460_v50, %v4439_v13 }
 0x20b   : > { %v1472_v59 = vpop.permute.xlu0 %1471 }
 0x20c   : > { %1453 = vperm.xlu1 %3843, %v4415_v31  }
 0x20f   : > { %v1457_v47 = vpop.permute.xlu1 %1456  ;;  %v1463_v46 = vpop.permute.xlu0 %1462 }
 0x210   : > { %v1712_v58 = vrot.slane %v1457_v47, %v4434_v24  ;;  %v1721_v14 = vrot.slane %v1463_v46, %v4442_v63  ;;  %v1735_v47 = vrot.slane %v1472_v59, %v4439_v13 }
 0x212   : > { %v1717_v45 = vsel %vm1560_vm2, %v1716_v57, %v1712_v58 }
 0x213   : > { %v1469_v40 = vpop.permute.xlu1 %1468  ;;  %v1481_v1 = vpop.permute.xlu0 %1480 }
 0x214   : > { %v1731_v42 = vrot.slane %v1469_v40, %v4434_v24  ;;  %v1750_v34 = vrot.slane %v1481_v1, %v4434_v24 }
 0x216   : > { %v1736_v19 = vsel %vm1560_vm2, %v1735_v47, %v1731_v42 }
 0x217   : > { %v1475_v39 = vpop.permute.xlu1 %1474  ;;  %v4418_v9 = vpop.permute.xlu0 %1465 }
 0x218   : > { %v1740_v18 = vrot.slane %v1475_v39, %v4442_v63  ;;  %v1722_v39 = vsel %vm1567_vm3, %v1721_v14, %v1717_v45  ;;  %v1726_v57 = vrot.slane %v4418_v9, %v4452_v25 }
 0x21a   : > { %v1741_v59 = vsel %vm1567_vm3, %v1740_v18, %v1736_v19 }
 0x21b   : > { %v1484_v44 = vpop.permute.xlu1 %1483  ;;  %v1487_v43 = vpop.permute.xlu0 %1486 }
 0x21c   : > { %v1754_v48 = vrot.slane %v1484_v44, %v4439_v13  ;;  %v1759_v44 = vrot.slane %v1487_v43, %v4442_v63 }
 0x21e   : > { %v1755_v40 = vsel %vm1560_vm2, %v1754_v48, %v1750_v34 }
 0x21f   : > { %v4420_v60 = vpop.permute.xlu1 %1477  ;;  %v1496_v10 = vpop.permute.xlu0 %1495  ;;  %v1760_v43 = vsel %vm1567_vm3, %v1759_v44, %v1755_v40 }
 0x220   : > { %v1745_v34 = vrot.slane %v4420_v60, %v4452_v25  ;;  %v1773_v42 = vrot.slane %v1496_v10, %v4439_v13 }
 0x223   : > { %v1493_v17 = vpop.permute.xlu1 %1492  ;;  %v4422_v2 = vpop.permute.xlu0 %1498 }
 0x224   : > { %v1769_v5 = vrot.slane %v1493_v17, %v4434_v24  ;;  %v1778_v18 = vrot.slane %v4422_v2, %v4442_v63 }
 0x226   : > { %v1774_v1 = vsel %vm1560_vm2, %v1773_v42, %v1769_v5 }
 0x227   : > { %v4424_v49 = vpop.permute.xlu1 %1489  ;;  %v1508_v21 = vpop.permute.xlu0 %1507  ;;  %v1779_v40 = vsel %vm1567_vm3, %v1778_v18, %v1774_v1 }
 0x228   : > { %v1764_v45 = vrot.slane %v4424_v49, %v4452_v25 }
 0x22a   : > { %v1765_v19 = vsel %vm1574_vm4, %v1764_v45, %v1760_v43 }
 0x22b   : > { %v1505_v33 = vpop.permute.xlu1 %1504  ;;  %v4426_v31 = vpop.permute.xlu0 %1510 }
 0x22c   : > { %v1788_v58 = vrot.slane %v1505_v33, %v4434_v24  ;;  %v1792_v33 = vrot.slane %v1508_v21, %v4439_v13  ;;  %v1797_v10 = vrot.slane %v4426_v31, %v4442_v63  ;;  %v1746_v21 = vsel %vm1574_vm4, %v1745_v34, %v1741_v59 }
 0x22e   : > { %v1793_v14 = vsel %vm1560_vm2, %v1792_v33, %v1788_v58 }
 0x22f   : > { %v4428_v51 = vpop.permute.xlu1 %1501  ;;  %v1520_v56 = vpop.permute.xlu0 %1519  ;;  %v1798_v5 = vsel %vm1567_vm3, %v1797_v10, %v1793_v14 }
 0x230   : > { %v1811_v60 = vrot.slane %v1520_v56, %v4439_v13 }
 0x233   : > { %v1517_v6 = vpop.permute.xlu1 %1516  ;;  %v4436_v38 = vpop.permute.xlu0 %1522 }
 0x234   : > { %v1807_v48 = vrot.slane %v1517_v6, %v4434_v24  ;;  %v1783_v6 = vrot.slane %v4428_v51, %v4452_v25  ;;  %v1816_v2 = vrot.slane %v4436_v38, %v4442_v63 }
 0x236   : > { %v1812_v47 = vsel %vm1560_vm2, %v1811_v60, %v1807_v48  ;;  %v1784_v59 = vsel %vm1574_vm4, %v1783_v6, %v1779_v40 }
 0x237   : > { %v4446_v36 = vpop.permute.xlu1 %1513  ;;  %v1532_v62 = vpop.permute.xlu0 %1531  ;;  %v1817_v34 = vsel %vm1567_vm3, %v1816_v2, %v1812_v47 }
 0x238   : > { %v1802_v49 = vrot.slane %v4446_v36, %v4452_v25 }
 0x23a   : > { %v1803_v42 = vsel %vm1574_vm4, %v1802_v49, %v1798_v5 }
 0x23b   : > { %v1529_v37 = vpop.permute.xlu1 %1528  ;;  %v1535_v50 = vpop.permute.xlu0 %1534 }
 0x23c   : > { %v1826_v9 = vrot.slane %v1529_v37, %v4434_v24  ;;  %v1830_v37 = vrot.slane %v1532_v62, %v4439_v13  ;;  %v1835_v31 = vrot.slane %v1535_v50, %v4442_v63  ;;  %v1727_v62 = vsel %vm1574_vm4, %v1726_v57, %v1722_v39 }
 0x23d   : > { %v1875_v58 = vsel %vm1861_vm5, %v1746_v21, %v1727_v62 }
 0x23e   : > { %v1831_v38 = vsel %vm1560_vm2, %v1830_v37, %v1826_v9  ;;  %v1876_v43 = vsel %vm1863_vm6, %v1765_v19, %v1875_v58 }
 0x23f   : > { %v1526_v17 = vpop.permute.xlu1 %1525  ;;  %v1544_v46 = vpop.permute.xlu0 %1543  ;;  %v1836_v48 = vsel %vm1567_vm3, %v1835_v31, %v1831_v38  ;;  %v1877_v45 = vsel %vm1865_vm7, %v1784_v59, %v1876_v43 }
 0x240   : > { %v1821_v51 = vrot.slane %v1526_v17, %v4452_v25  ;;  %v1849_v39 = vrot.slane %v1544_v46, %v4439_v13  ;;  %v1878_v10 = vsel %vm1867_vm8, %v1803_v42, %v1877_v45 }
 0x242   : > { %v1822_v17 = vsel %vm1574_vm4, %v1821_v51, %v1817_v34 }
 0x243   : > { %v1541_v44 = vpop.permute.xlu1 %1540  ;;  %v1538_v56 = vpop.permute.xlu0 %1537  ;;  %v1879_v46 = vsel %vm1869_vm9, %v1822_v17, %v1878_v10 }
 0x244   : > { %v1840_v36 = vrot.slane %v1538_v56, %v4452_v25  ;;  %v1845_v50 = vrot.slane %v1541_v44, %v4434_v24 }
 0x246   : > { %v1841_v33 = vsel %vm1574_vm4, %v1840_v36, %v1836_v48  ;;  %v1850_v6 = vsel %vm1560_vm2, %v1849_v39, %v1845_v50 }
 0x247   : > { %v1547_v57 = vpop.permute.xlu1 %1546  ;;  %v1550_v18 = vpop.permute.xlu0 %1549  ;;  %v1880_v37 = vsel %vm1871_vm10, %v1841_v33, %v1879_v46 }
 0x248   : > { %v1854_v9 = vrot.slane %v1547_v57, %v4442_v63  ;;  %v1859_v1 = vrot.slane %v1550_v18, %v4452_v25 }
 0x24a   : > { %v1855_v60 = vsel %vm1567_vm3, %v1854_v9, %v1850_v6 }
 0x24b   : > { %v1364_v14 = vpop.permute.xlu1 %1363  ;;  %v1361_v2 = vpop.permute.xlu0 %1360  ;;  %v1860_v49 = vsel %vm1574_vm4, %v1859_v1, %v1855_v60 }
 0x24c   : > { %v4521_v21 = vsel %vm5211_vm11, %v1860_v49, %v1880_v37  ;;  %v1559_v33 = vrot.slane %v1364_v14, %v4439_v13  ;;  %v1554_v9 = vrot.slane %v1361_v2, %v4434_v24 }
 0x24d   : > { %5276 = vst [vmem:[#allocation61_spill] sm:$0xff] %v4521_v21  ;;  %v1888_v47 = vsel %vm5210_vm12, %v4521_v21, inf }
 0x24e   : > { %1889 = vmin.xlane.f32.xlu0 %v1888_v47  ;;  %v1561_v41 = vsel %vm1560_vm2, %v1559_v33, %v1554_v9 }
 0x24f   : > { %v1373_v31 = vpop.permute.xlu1 %1372  ;;  %v1376_v51 = vpop.permute.xlu0 %1375 }
 0x250   : > { %v1579_v6 = vrot.slane %v1373_v31, %v4434_v24  ;;  %v1583_v60 = vrot.slane %v1376_v51, %v4439_v13 }
 0x252   : > { %v1584_v31 = vsel %vm1560_vm2, %v1583_v60, %v1579_v6 }
 0x253   : > { %v1367_v44 = vpop.permute.xlu1 %1366  ;;  %v1379_v56 = vpop.permute.xlu0 %1378 }
 0x254   : > { %v1566_v46 = vrot.slane %v1367_v44, %v4442_v63  ;;  %v1588_v49 = vrot.slane %v1379_v56, %v4442_v63 }
 0x256   : > { %v1568_v51 = vsel %vm1567_vm3, %v1566_v46, %v1561_v41 }
 0x257   : > { %v1385_v40 = vpop.permute.xlu1 %1384  ;;  %v1388_v19 = vpop.permute.xlu0 %1387 }
 0x258   : > { %v1598_v37 = vrot.slane %v1385_v40, %v4434_v24  ;;  %v1602_v47 = vrot.slane %v1388_v19, %v4439_v13  ;;  %v1589_v40 = vsel %vm1567_vm3, %v1588_v49, %v1584_v31 }
 0x25a   : > { %v1603_v19 = vsel %vm1560_vm2, %v1602_v47, %v1598_v37 }
 0x25b   : > { %v1370_v38 = vpop.permute.xlu1 %1369  ;;  %v1382_v36 = vpop.permute.xlu0 %1381 }
 0x25c   : > { %v1573_v21 = vrot.slane %v1370_v38, %v4452_v25  ;;  %v1593_v14 = vrot.slane %v1382_v36, %v4452_v25 }
 0x25e   : > { %v1575_v38 = vsel %vm1574_vm4, %v1573_v21, %v1568_v51 }
 0x25f   : > { %v1391_v62 = vpop.permute.xlu1 %1390  ;;  %v1397_v5 = vpop.permute.xlu0 %1396 }
 0x260   : > { %v1607_v2 = vrot.slane %v1391_v62, %v4442_v63  ;;  %v1594_v62 = vsel %vm1574_vm4, %v1593_v14, %v1589_v40  ;;  %v1617_v9 = vrot.slane %v1397_v5, %v4434_v24 }
 0x262   : > { %v1608_v33 = vsel %vm1567_vm3, %v1607_v2, %v1603_v19 }
 0x263   : > { %v1400_v59 = vpop.permute.xlu1 %1399  ;;  %v1394_v50 = vpop.permute.xlu0 %1393 }
 0x264   : > { %v1621_v44 = vrot.slane %v1400_v59, %v4439_v13  ;;  %v1612_v41 = vrot.slane %v1394_v50, %v4452_v25 }
 0x266   : > { %v1622_v21 = vsel %vm1560_vm2, %v1621_v44, %v1617_v9 }
 0x267   : > { %v1403_v58 = vpop.permute.xlu1 %1402  ;;  %v1409_v34 = vpop.permute.xlu0 %1408 }
 0x268   : > { %v1626_v59 = vrot.slane %v1403_v58, %v4442_v63  ;;  %v1636_v60 = vrot.slane %v1409_v34, %v4434_v24 }
 0x26b   : > { %v1412_v42 = vpop.permute.xlu1 %1411  ;;  %v1415_v43 = vpop.permute.xlu0 %1414 }
 0x26c   : > { %v1640_v36 = vrot.slane %v1412_v42, %v4439_v13  ;;  %v1645_v42 = vrot.slane %v1415_v43, %v4442_v63 }
 0x26e   : > { %v1641_v5 = vsel %vm1560_vm2, %v1640_v36, %v1636_v60 }
 0x26f   : > { %v1406_v48 = vpop.permute.xlu1 %1405  ;;  %v1424_v17 = vpop.permute.xlu0 %1423 }
 0x270   : > { %v1631_v37 = vrot.slane %v1406_v48, %v4452_v25  ;;  %v1659_v47 = vrot.slane %v1424_v17, %v4439_v13  ;;  %v1613_v48 = vsel %vm1574_vm4, %v1612_v41, %v1608_v33  ;;  %v1627_v17 = vsel %vm1567_vm3, %v1626_v59, %v1622_v21 }
 0x273   : > { %v1421_v39 = vpop.permute.xlu1 %1420  ;;  %v1427_v57 = vpop.permute.xlu0 %1426 }
 0x274   : > { %v1655_v6 = vrot.slane %v1421_v39, %v4434_v24  ;;  %v1664_v39 = vrot.slane %v1427_v57, %v4442_v63 }
 0x276   : > { %v1660_v34 = vsel %vm1560_vm2, %v1659_v47, %v1655_v6 }
 0x277   : > { %v1418_v18 = vpop.permute.xlu1 %1417  ;;  %v1436_v45 = vpop.permute.xlu0 %1435  ;;  %v1665_v44 = vsel %vm1567_vm3, %v1664_v39, %v1660_v34 }
 0x278   : > { %v1650_v50 = vrot.slane %v1418_v18, %v4452_v25  ;;  %v1678_v58 = vrot.slane %v1436_v45, %v4439_v13  ;;  %v1646_v18 = vsel %vm1567_vm3, %v1645_v42, %v1641_v5  ;;  %v1632_v45 = vsel %vm1574_vm4, %v1631_v37, %v1627_v17 }
 0x27a   : > { %v1651_v40 = vsel %vm1574_vm4, %v1650_v50, %v1646_v18 }
 0x27b   : > { %v1433_v1 = vpop.permute.xlu1 %1432  ;;  %v1439_v10 = vpop.permute.xlu0 %1438 }
 0x27c   : > { %v1674_v46 = vrot.slane %v1433_v1, %v4434_v24  ;;  %v1683_v1 = vrot.slane %v1439_v10, %v4442_v63 }
 0x27e   : > { %v1679_v31 = vsel %vm1560_vm2, %v1678_v58, %v1674_v46 }
 0x27f   : > { %v1430_v29 = vpop.permute.xlu1 %1429  ;;  %v1448_v56 = vpop.permute.xlu0 %1447  ;;  %v1684_v33 = vsel %vm1567_vm3, %v1683_v1, %v1679_v31  ;;  %v5281_v31 = vld [vmem:[#allocation8_spill] sm:$0xff] }
 0x280   : > { %v1669_v14 = vrot.slane %v1430_v29, %v4452_v25  ;;  %v1697_v51 = vrot.slane %v1448_v56, %v4439_v13  ;;  %v1862_v29 = vsel %vm1861_vm5, %v1594_v62, %v1575_v38 }
 0x281   : > { %v1864_v36 = vsel %vm1863_vm6, %v1613_v48, %v1862_v29 }
 0x282   : > { %v1670_v9 = vsel %vm1574_vm4, %v1669_v14, %v1665_v44  ;;  %v1866_v56 = vsel %vm1865_vm7, %v1632_v45, %v1864_v36  ;;  %v5286_v36 = vld [vmem:[#allocation9_spill] sm:$0xff] }
 0x283   : > { %v1445_v49 = vpop.permute.xlu1 %1444  ;;  %v1451_v2 = vpop.permute.xlu0 %1450  ;;  %v1868_v38 = vsel %vm1867_vm8, %v1651_v40, %v1866_v56  ;;  %v5284_v40 = vld [vmem:[#allocation16_spill] sm:$0xff]  ;;  %v5287_v56 = vld [vmem:[#allocation18_spill] sm:$0xff] }
 0x284   : > { %v1693_v43 = vrot.slane %v1445_v49, %v4434_v24  ;;  %v1702_v19 = vrot.slane %v1451_v2, %v4442_v63  ;;  %v1870_v46 = vsel %vm1869_vm9, %v1670_v9, %v1868_v38 }
 0x286   : > { %v1698_v6 = vsel %vm1560_vm2, %v1697_v51, %v1693_v43  ;;  %v5282_v51 = vld [vmem:[#allocation14_spill] sm:$0xff] }
 0x287   : > { %v1442_v57 = vpop.permute.xlu1 %1441  ;;  %v1703_v60 = vsel %vm1567_vm3, %v1702_v19, %v1698_v6  ;;  %v5285_v19 = vld [vmem:[#allocation19_spill] sm:$0xff] }
 0x288   : > { %v1688_v10 = vrot.slane %v1442_v57, %v4452_v25 }
 0x28a   : > { %v1689_v41 = vsel %vm1574_vm4, %v1688_v10, %v1684_v33  ;;  %v5283_v10 = vld [vmem:[#allocation17_spill] sm:$0xff] }
 0x28b   : > { %v1454_v59 = vpop.permute.xlu1 %1453  ;;  %v1872_v21 = vsel %vm1871_vm10, %v1689_v41, %v1870_v46  ;;  %v5288_v41 = vld [vmem:[#allocation21_spill] sm:$0xff]  ;;  %v5291_v46 = vld [vmem:[#allocation10_spill] sm:$0xff] }
 0x28c   : > { %v1707_v62 = vrot.slane %v1454_v59, %v4452_v25 }
 0x28e   : > { %v1708_v49 = vsel %vm1574_vm4, %v1707_v62, %v1703_v60  ;;  %v5289_v62 = vld [vmem:[#allocation20_spill] sm:$0xff]  ;;  %v5290_v60 = vld [vmem:[#allocation23_spill] sm:$0xff] }
 0x28f   : > { %v4588_v42 = vsel %vm5211_vm11, %v1708_v49, %v1872_v21 }
 0x290   : > { %v1885_v37 = vsel %vm5210_vm12, %v4588_v42, inf }
 0x291   : > { %1886 = vmin.xlane.f32.xlu1 %v1885_v37 }
 0x2db   : > { %v4592_v47 = vpop.xlane.xlu0 %1889 }
 0x2dc   : > { %v1928_v5 = vrot.slane %v4592_v47, %v4107_v20  ;;  %v1932_v39 = vrot.slane %v4592_v47, %v4111_v26  ;;  %v1948_v57 = vrot.slane %v4592_v47, %v5281_v31  ;;  %v1952_v33 = vrot.slane %v4592_v47, %v5286_v36 }
 0x2dd   : > { %v4660_v49 = vrot.slane %v4592_v47, %v5291_v46 }
 0x2de   : > { %vm2006_vm13 = vcmp.eq.f32.partialorder %v4163_v61, %v1928_v5  ;;  %vm2005_vm14 = vcmp.eq.f32.partialorder %v4171_v3, %v1928_v5  ;;  %vm2010_vm15 = vcmp.eq.f32.partialorder %v4167_v0, %v1932_v39  ;;  %vm2009_vm1 = vcmp.eq.f32.partialorder %v4179_v7, %v1932_v39 }
 0x2df   : > { %v2085_v50 = vsel %vm2006_vm13, %v4153_v52, 32  ;;  %v2084_v58 = vsel %vm2005_vm14, %v4155_v53, 32  ;;  %v2089_v34 = vsel %vm2010_vm15, %v4153_v52, 32  ;;  %v2088_v1 = vsel %vm2009_vm1, %v4155_v53, 32 }
 0x2e0   : > { %2216 = vperm.xlu0 %3844, %v2085_v50   ;;  %2213 = vperm.xlu1 %3843, %v2084_v58   ;;  %vm2007_vm12 = vcmp.eq.f32.partialorder %v4174_v4, %v1928_v5  ;;  %vm2011_vm11 = vcmp.eq.f32.partialorder %v4187_v11, %v1932_v39  ;;  %v1936_v61 = vrot.slane %v4592_v47, %v4115_v28 }
 0x2e1   : > { %v2086_v3 = vsel %vm2007_vm12, %v4157_v54, 32  ;;  %v2090_v14 = vsel %vm2011_vm11, %v4157_v54, 32  ;;  %vm2008_vm15 = vcmp.eq.f32.partialorder %v4190_v12, %v1928_v5  ;;  %vm2012_vm1 = vcmp.eq.f32.partialorder %v4203_v22, %v1932_v39  ;;  %v5292_v5 = vld [vmem:[#allocation22_spill] sm:$0xff]  ;;  %v5293_v39 = vld [vmem:[#allocation25_spill] sm:$0xff] }
 0x2e2   : > { %vm2013_vm13 = vcmp.eq.f32.partialorder %v4182_v8, %v1936_v61  ;;  %vm2014_vm14 = vcmp.eq.f32.partialorder %v4195_v15, %v1936_v61  ;;  %v1940_v4 = vrot.slane %v4592_v47, %v4119_v30  ;;  %v2087_v11 = vsel %vm2008_vm15, %v4159_v55, 32 }
 0x2e3   : > { %v2092_v0 = vsel %vm2013_vm13, %v4155_v53, 32  ;;  %v2093_v7 = vsel %vm2014_vm14, %v4153_v52, 32  ;;  %v2091_v43 = vsel %vm2012_vm1, %v4159_v55, 32  ;;  %vm2015_vm11 = vcmp.eq.f32.partialorder %v4198_v16, %v1936_v61  ;;  %v5277_v16 = vld [vmem:[#allocation11_spill] sm:$0xff] }
 0x2e4   : > { %2228 = vperm.xlu0 %3844, %v2089_v34   ;;  %2225 = vperm.xlu1 %3843, %v2088_v1   ;;  %vm2017_vm12 = vcmp.eq.f32.partialorder %v4211_v27, %v1940_v4  ;;  %v2094_v8 = vsel %vm2015_vm11, %v4157_v54, 32  ;;  %vm2018_vm13 = vcmp.eq.f32.partialorder %v4206_v23, %v1940_v4  ;;  %vm2016_vm14 = vcmp.eq.f32.partialorder %v4219_v35, %v1936_v61  ;;  %v5278_v27 = vld [vmem:[#allocation13_spill] sm:$0xff]  ;;  %v5279_v23 = vld [vmem:[#allocation12_spill] sm:$0xff]  ;;  %v5280_v35 = vld [vmem:[#allocation15_spill] sm:$0xff] }
 0x2e5   : > { %v2096_v15 = vsel %vm2017_vm12, %v4155_v53, 32  ;;  %v1944_v12 = vrot.slane %v4592_v47, %v4123_v32  ;;  %v2097_v22 = vsel %vm2018_vm13, %v4153_v52, 32  ;;  %v2095_v2 = vsel %vm2016_vm14, %v4159_v55, 32  ;;  %v5294_v47 = vld [vmem:[#allocation24_spill] sm:$0xff]  ;;  %v5295_v1 = vld [vmem:[#allocation26_spill] sm:$0xff] }
 0x2e6   : > { %vm2019_vm15 = vcmp.eq.f32.partialorder %v5277_v16, %v1940_v4  ;;  %vm2020_vm12 = vcmp.eq.f32.partialorder %v5280_v35, %v1940_v4  ;;  %vm2025_vm14 = vcmp.eq.f32.partialorder %v5283_v10, %v1948_v57  ;;  %v5297_v4 = vld [vmem:[#allocation29_spill] sm:$0xff]  ;;  %v5306_v10 = vld [vmem:[#allocation40_spill] sm:$0xff] }
 0x2e7   : > { %vm2021_vm1 = vcmp.eq.f32.partialorder %v5278_v27, %v1944_v12  ;;  %v2098_v48 = vsel %vm2019_vm15, %v4157_v54, 32  ;;  %vm2022_vm11 = vcmp.eq.f32.partialorder %v5279_v23, %v1944_v12  ;;  %v2099_v45 = vsel %vm2020_vm12, %v4159_v55, 32 }
 0x2e8   : > { %2219 = vperm.xlu0 %3844, %v2086_v3   ;;  %2231 = vperm.xlu1 %3843, %v2090_v14   ;;  %v2100_v17 = vsel %vm2021_vm1, %v4155_v53, 32  ;;  %v2101_v18 = vsel %vm2022_vm11, %v4153_v52, 32  ;;  %vm2023_vm13 = vcmp.eq.f32.partialorder %v5282_v51, %v1944_v12  ;;  %v2104_v44 = vsel %vm2025_vm14, %v4155_v53, 32 }
 0x2e9   : > { %v2102_v29 = vsel %vm2023_vm13, %v4157_v54, 32  ;;  %vm2026_vm15 = vcmp.eq.f32.partialorder %v5284_v40, %v1948_v57  ;;  %vm2024_vm1 = vcmp.eq.f32.partialorder %v5285_v19, %v1944_v12  ;;  %vm2027_vm11 = vcmp.eq.f32.partialorder %v5287_v56, %v1948_v57  ;;  %v5308_v19 = vld [vmem:[#allocation42_spill] sm:$0xff]  ;;  %v5310_v56 = vld [vmem:[#allocation44_spill] sm:$0xff] }
 0x2ea   : > { %v2105_v9 = vsel %vm2026_vm15, %v4153_v52, 32  ;;  %v2103_v6 = vsel %vm2024_vm1, %v4159_v55, 32  ;;  %vm2029_vm12 = vcmp.eq.f32.partialorder %v5288_v41, %v1952_v33  ;;  %v2106_v59 = vsel %vm2027_vm11, %v4157_v54, 32  ;;  %v5311_v41 = vld [vmem:[#allocation43_spill] sm:$0xff] }
 0x2eb   : > { %v2108_v38 = vsel %vm2029_vm12, %v4155_v53, 32  ;;  %vm2030_vm13 = vcmp.eq.f32.partialorder %v5289_v62, %v1952_v33  ;;  %vm2028_vm14 = vcmp.eq.f32.partialorder %v5290_v60, %v1948_v57  ;;  %vm2031_vm15 = vcmp.eq.f32.partialorder %v5292_v5, %v1952_v33  ;;  %v5304_v57 = vld [vmem:[#allocation38_spill] sm:$0xff]  ;;  %v5313_v60 = vld [vmem:[#allocation45_spill] sm:$0xff]  ;;  %v5314_v5 = vld [vmem:[#allocation48_spill] sm:$0xff] }
 0x2ec   : > { %2237 = vperm.xlu0 %3844, %v2092_v0   ;;  %2240 = vperm.xlu1 %3843, %v2093_v7   ;;  %v2109_v21 = vsel %vm2030_vm13, %v4153_v52, 32  ;;  %v2107_v37 = vsel %vm2028_vm14, %v4159_v55, 32  ;;  %vm2033_vm1 = vcmp.eq.f32.partialorder %v5293_v39, %v4660_v49  ;;  %v2110_v50 = vsel %vm2031_vm15, %v4157_v54, 32  ;;  %v5296_v7 = vld [vmem:[#allocation30_spill] sm:$0xff]  ;;  %v5315_v39 = vld [vmem:[#allocation47_spill] sm:$0xff] }
 0x2ed   : > { %v2112_v58 = vsel %vm2033_vm1, %v4155_v53, 32  ;;  %vm2034_vm11 = vcmp.eq.f32.partialorder %v5294_v47, %v4660_v49  ;;  %vm2032_vm12 = vcmp.eq.f32.partialorder %v5295_v1, %v1952_v33  ;;  %v5309_v33 = vld [vmem:[#allocation41_spill] sm:$0xff]  ;;  %v5312_v62 = vld [vmem:[#allocation46_spill] sm:$0xff] }
 0x2ee   : > { %v2113_v34 = vsel %vm2034_vm11, %v4153_v52, 32  ;;  %v2111_v61 = vsel %vm2032_vm12, %v4159_v55, 32  ;;  %v5316_v47 = vld [vmem:[#allocation50_spill] sm:$0xff] }
 0x2f0   : > { %2222 = vperm.xlu0 %3844, %v2087_v11   ;;  %2234 = vperm.xlu1 %3843, %v2091_v43  }
 0x2f4   : > { %2243 = vperm.xlu0 %3844, %v2094_v8   ;;  %2249 = vperm.xlu1 %3843, %v2096_v15   ;;  %v5298_v8 = vld [vmem:[#allocation32_spill] sm:$0xff]  ;;  %v5299_v15 = vld [vmem:[#allocation31_spill] sm:$0xff] }
 0x2f8   : > { %2252 = vperm.xlu0 %3844, %v2097_v22   ;;  %2246 = vperm.xlu1 %3843, %v2095_v2   ;;  %v5301_v22 = vld [vmem:[#allocation33_spill] sm:$0xff] }
 0x2fc   : > { %2255 = vperm.xlu0 %3844, %v2098_v48   ;;  %2261 = vperm.xlu1 %3843, %v2100_v17   ;;  %v5302_v48 = vld [vmem:[#allocation36_spill] sm:$0xff]  ;;  %v5303_v17 = vld [vmem:[#allocation35_spill] sm:$0xff] }
 0x300   : > { %2264 = vperm.xlu0 %3844, %v2101_v18   ;;  %2258 = vperm.xlu1 %3843, %v2099_v45   ;;  %v5305_v18 = vld [vmem:[#allocation37_spill] sm:$0xff] }
 0x304   : > { %2267 = vperm.xlu0 %3844, %v2102_v29   ;;  %2273 = vperm.xlu1 %3843, %v2104_v44   ;;  %v5307_v29 = vld [vmem:[#allocation39_spill] sm:$0xff] }
 0x308   : > { %2276 = vperm.xlu0 %3844, %v2105_v9   ;;  %2270 = vperm.xlu1 %3843, %v2103_v6  }
 0x30c   : > { %2279 = vperm.xlu0 %3844, %v2106_v59   ;;  %2285 = vperm.xlu1 %3843, %v2108_v38  }
 0x310   : > { %2288 = vperm.xlu0 %3844, %v2109_v21   ;;  %2282 = vperm.xlu1 %3843, %v2107_v37  }
 0x314   : > { %2291 = vperm.xlu0 %3844, %v2110_v50   ;;  %2297 = vperm.xlu1 %3843, %v2112_v58  }
 0x318   : > { %2300 = vperm.xlu0 %3844, %v2113_v34   ;;  %v5317_v34 = vld [vmem:[#allocation49_spill] sm:$0xff] }
 0x31c   : > { %2294 = vperm.xlu0 %3844, %v2111_v61  }
 0x31e   : > { %v4674_v3 = vpop.xlane.xlu1 %1886 }
 0x31f   : > { %v1896_v14 = vrot.slane %v4674_v3, %v4107_v20  ;;  %v1900_v0 = vrot.slane %v4674_v3, %v4111_v26  ;;  %v5300_v26 = vld [vmem:[#allocation34_spill] sm:$0xff]  ;;  %v1904_v2 = vrot.slane %v4674_v3, %v4115_v28  ;;  %v1908_v28 = vrot.slane %v4674_v3, %v4119_v30 }
 0x320   : > { %v1912_v30 = vrot.slane %v4674_v3, %v4123_v32  ;;  %v1916_v32 = vrot.slane %v4674_v3, %v5281_v31  ;;  %v1920_v31 = vrot.slane %v4674_v3, %v5286_v36  ;;  %v1924_v36 = vrot.slane %v4674_v3, %v5291_v46 }
 0x321   : > { %vm1974_vm13 = vcmp.eq.f32.partialorder %v5296_v7, %v1896_v14  ;;  %vm1973_vm14 = vcmp.eq.f32.partialorder %v5297_v4, %v1896_v14  ;;  %vm1978_vm15 = vcmp.eq.f32.partialorder %v5298_v8, %v1900_v0  ;;  %vm1977_vm1 = vcmp.eq.f32.partialorder %v5299_v15, %v1900_v0 }
 0x322   : > { %v2053_v11 = vsel %vm1974_vm13, %v4153_v52, 32  ;;  %v2052_v43 = vsel %vm1973_vm14, %v4155_v53, 32  ;;  %v2057_v12 = vsel %vm1978_vm15, %v4153_v52, 32  ;;  %v2056_v20 = vsel %vm1977_vm1, %v4155_v53, 32 }
 0x323   : > { %2120 = vperm.xlu0 %3844, %v2053_v11   ;;  %2117 = vperm.xlu1 %3843, %v2052_v43   ;;  %vm1979_vm11 = vcmp.eq.f32.partialorder %v5300_v26, %v1900_v0  ;;  %vm1975_vm12 = vcmp.eq.f32.partialorder %v5301_v22, %v1896_v14  ;;  %vm1982_vm13 = vcmp.eq.f32.partialorder %v5302_v48, %v1904_v2  ;;  %v5320_v11 = vld [vmem:[#allocation54_spill] sm:$0xff]  ;;  %v5321_v43 = vld [vmem:[#allocation53_spill] sm:$0xff]  ;;  %v5327_v48 = vld [vmem:[#allocation59_spill] sm:$0xff] }
 0x324   : > { %v2058_v16 = vsel %vm1979_vm11, %v4157_v54, 32  ;;  %v2054_v27 = vsel %vm1975_vm12, %v4157_v54, 32  ;;  %vm1981_vm14 = vcmp.eq.f32.partialorder %v5303_v17, %v1904_v2  ;;  %v2061_v23 = vsel %vm1982_vm13, %v4153_v52, 32 }
 0x325   : > { %v2060_v35 = vsel %vm1981_vm14, %v4155_v53, 32  ;;  %vm1980_vm15 = vcmp.eq.f32.partialorder %v5304_v57, %v1900_v0  ;;  %vm1976_vm1 = vcmp.eq.f32.partialorder %v5305_v18, %v1896_v14  ;;  %vm1985_vm11 = vcmp.eq.f32.partialorder %v5306_v10, %v1908_v28  ;;  %v5318_v14 = vld [vmem:[#allocation52_spill] sm:$0xff]  ;;  %v5319_v0 = vld [vmem:[#allocation51_spill] sm:$0xff] }
 0x326   : > { %v2059_v45 = vsel %vm1980_vm15, %v4159_v55, 32  ;;  %v2055_v51 = vsel %vm1976_vm1, %v4159_v55, 32  ;;  %vm1983_vm12 = vcmp.eq.f32.partialorder %v5307_v29, %v1904_v2  ;;  %v2064_v44 = vsel %vm1985_vm11, %v4155_v53, 32  ;;  %v5328_v57 = vld [vmem:[#allocation60_spill] sm:$0xff]  ;;  %v5329_v29 = vld [vmem:[#allocation27_spill] sm:$0xff] }
 0x327   : > { %2132 = vperm.xlu0 %3844, %v2057_v12   ;;  %2129 = vperm.xlu1 %3843, %v2056_v20   ;;  %v2062_v40 = vsel %vm1983_vm12, %v4157_v54, 32  ;;  %vm1984_vm13 = vcmp.eq.f32.partialorder %v5308_v19, %v1904_v2  ;;  %vm1986_vm14 = vcmp.eq.f32.partialorder %v5309_v33, %v1908_v28  ;;  %vm1989_vm15 = vcmp.eq.f32.partialorder %v5310_v56, %v1912_v30  ;;  %v5322_v12 = vld [vmem:[#allocation56_spill] sm:$0xff]  ;;  %v5323_v20 = vld [vmem:[#allocation55_spill] sm:$0xff]  ;;  %v5324_v2 = vld [vmem:[#allocation58_spill] sm:$0xff] }
 0x328   : > { %v2063_v9 = vsel %vm1984_vm13, %v4159_v55, 32  ;;  %v2065_v6 = vsel %vm1986_vm14, %v4153_v52, 32  ;;  %vm1987_vm1 = vcmp.eq.f32.partialorder %v5311_v41, %v1908_v28  ;;  %v2068_v59 = vsel %vm1989_vm15, %v4155_v53, 32 }
 0x329   : > { %v2066_v38 = vsel %vm1987_vm1, %v4157_v54, 32  ;;  %vm1991_vm11 = vcmp.eq.f32.partialorder %v5312_v62, %v1912_v30  ;;  %vm1990_vm12 = vcmp.eq.f32.partialorder %v5313_v60, %v1912_v30  ;;  %vm1994_vm13 = vcmp.eq.f32.partialorder %v5314_v5, %v1916_v32  ;;  %v533_v5 = vld [vmem:[%s5142_s5] sm:$0x7] }
 0x32a   : > { %v2070_v21 = vsel %vm1991_vm11, %v4157_v54, 32  ;;  %v2069_v37 = vsel %vm1990_vm12, %v4153_v52, 32  ;;  %vm1988_vm14 = vcmp.eq.f32.partialorder %v5315_v39, %v1908_v28  ;;  %v2073_v50 = vsel %vm1994_vm13, %v4153_v52, 32  ;;  %v529_v39 = vld [vmem:[%s4063_s28] sm:$0xff] }
 0x32b   : > { %2135 = vperm.xlu0 %3844, %v2058_v16   ;;  %2123 = vperm.xlu1 %3843, %v2054_v27   ;;  %v2067_v58 = vsel %vm1988_vm14, %v4159_v55, 32  ;;  %vm1995_vm15 = vcmp.eq.f32.partialorder %v5316_v47, %v1916_v32  ;;  %vm1993_vm1 = vcmp.eq.f32.partialorder %v5317_v34, %v1916_v32  ;;  %vm1998_vm11 = vcmp.eq.f32.partialorder %v5318_v14, %v1920_v31  ;;  %v5325_v16 = vld [vmem:[#allocation57_spill] sm:$0xff]  ;;  %v5326_v27 = vld [vmem:[#allocation28_spill] sm:$0xff] }
 0x32c   : > { %v2074_v1 = vsel %vm1995_vm15, %v4157_v54, 32  ;;  %v2072_v61 = vsel %vm1993_vm1, %v4155_v53, 32  ;;  %vm1992_vm12 = vcmp.eq.f32.partialorder %v5319_v0, %v1912_v30  ;;  %v2077_v7 = vsel %vm1998_vm11, %v4153_v52, 32  ;;  %3650 = vmatprep.mubr.msk.f32.mxu0 %vm534_vm0, %v529_v39  ;;  %v531_v34 = vld [vmem:[%s4063_s28 + $0x10] sm:$0xff]  ;;  %v528_v0 = vld [vmem:[%s5141_s4 + $0x8] sm:$0xff] }
 0x32d   : > { %v2071_v4 = vsel %vm1992_vm12, %v4159_v55, 32  ;;  %vm1999_vm13 = vcmp.eq.f32.partialorder %v5320_v11, %v1920_v31  ;;  %vm1997_vm14 = vcmp.eq.f32.partialorder %v5321_v43, %v1920_v31  ;;  %vm2002_vm15 = vcmp.eq.f32.partialorder %v5322_v12, %v1924_v36  ;;  %v532_v11 = vld [vmem:[%s4063_s28 + $0x18] sm:$0xff] }
 0x32e   : > { %v2078_v8 = vsel %vm1999_vm13, %v4157_v54, 32  ;;  %v2076_v15 = vsel %vm1997_vm14, %v4155_v53, 32  ;;  %vm1996_vm1 = vcmp.eq.f32.partialorder %v5323_v20, %v1916_v32  ;;  %v2081_v26 = vsel %vm2002_vm15, %v4153_v52, 32 }
 0x32f   : > { %2144 = vperm.xlu0 %3844, %v2061_v23   ;;  %2141 = vperm.xlu1 %3843, %v2060_v35   ;;  %v2075_v22 = vsel %vm1996_vm1, %v4159_v55, 32  ;;  %vm2003_vm11 = vcmp.eq.f32.partialorder %v5324_v2, %v1924_v36  ;;  %vm2001_vm12 = vcmp.eq.f32.partialorder %v5325_v16, %v1924_v36  ;;  %vm2036_vm13 = vcmp.eq.f32.partialorder %v5326_v27, %v4660_v49 }
 0x330   : > { %v2082_v46 = vsel %vm2003_vm11, %v4157_v54, 32  ;;  %v2080_v3 = vsel %vm2001_vm12, %v4155_v53, 32  ;;  %vm2000_vm14 = vcmp.eq.f32.partialorder %v5327_v48, %v1920_v31  ;;  %v2115_v52 = vsel %vm2036_vm13, %v4159_v55, 32  ;;  %v527_v31 = vld [vmem:[%s5141_s4] sm:$0xff] }
 0x331   : > { %v2079_v17 = vsel %vm2000_vm14, %v4159_v55, 32  ;;  %vm2004_vm15 = vcmp.eq.f32.partialorder %v5328_v57, %v1924_v36  ;;  %vm2035_vm1 = vcmp.eq.f32.partialorder %v5329_v29, %v4660_v49  ;;  %vm547_vm11 = vcmask 1042432   ;;  %v523_v36 = vld [vmem:[%s517_s1] sm:$0xff] }
 0x332   : > { %v2114_v33 = vsel %vm2035_vm1, %v4157_v54, 32  ;;  %3648 = vmatprep.subr.msk.mxu0 %vm547_vm11, %v533_v5  ;;  %vm636_vm12 = vcmask 130048  }
 0x333   : > { %2138 = vperm.xlu0 %3844, %v2059_v45   ;;  %2126 = vperm.xlu1 %3843, %v2055_v51   ;;  %v2083_v45 = vsel %vm2004_vm15, %v4159_v55, 32 }
 0x334   : > { %3649 = vmatpush3.msk.msra.mxu0 %vm547_vm11, %v533_v5 }
 0x337   : > { %2153 = vperm.xlu0 %3844, %v2064_v44   ;;  %2147 = vperm.xlu1 %3843, %v2062_v40  }
 0x33b   : > { %2150 = vperm.xlu0 %3844, %v2063_v9   ;;  %2156 = vperm.xlu1 %3843, %v2065_v6  }
 0x33f   : > { %2165 = vperm.xlu0 %3844, %v2068_v59   ;;  %2159 = vperm.xlu1 %3843, %v2066_v38  }
 0x343   : > { %2171 = vperm.xlu0 %3844, %v2070_v21   ;;  %2168 = vperm.xlu1 %3843, %v2069_v37  }
 0x347   : > { %2180 = vperm.xlu0 %3844, %v2073_v50   ;;  %2162 = vperm.xlu1 %3843, %v2067_v58   ;;  %v530_v50 = vld [vmem:[%s4063_s28 + $0x8] sm:$0xff] }
 0x348   : > { %3651 = vmatmul.mubr.msk.f32.vlgmr.msra.gmra.mrb[0].mxu0 %vm534_vm0, %v530_v50 }
 0x349   : > { %3653 = vmatprep.mubr.msk.f32.mxu0 %vm534_vm0, %v531_v34 }
 0x34b   : > { %2183 = vperm.xlu0 %3844, %v2074_v1   ;;  %2177 = vperm.xlu1 %3843, %v2072_v61  }
 0x34c   : > { %3654 = vmatmul.mubr.msk.f32.gmra.mrb[2].mxu0 %vm534_vm0, %v532_v11 }
 0x34d   : > { %3660 = vmatprep.mubr.msk.f32.mxu0 %vm636_vm12, %v523_v36 }
 0x34f   : > { %2192 = vperm.xlu0 %3844, %v2077_v7   ;;  %2174 = vperm.xlu1 %3843, %v2071_v4   ;;  %v3738_v4 = vpack.c.bf16 %v528_v0, %v527_v31 }
 0x351   : > { %3739 = vmatprep.subr.bf16.mxu0 %v3738_v4 }
 0x352   : > { %3741 = vmatpush3.bf16.msra.mxu0 %v3738_v4 }
 0x353   : > { %2195 = vperm.xlu0 %3844, %v2078_v8   ;;  %2189 = vperm.xlu1 %3843, %v2076_v15  }
 0x357   : > { %2204 = vperm.xlu0 %3844, %v2081_v26   ;;  %2186 = vperm.xlu1 %3843, %v2075_v22   ;;  %v524_v22 = vld [vmem:[%s517_s1 + $0x8] sm:$0xff] }
 0x358   : > { %3661 = vmatmul.mubr.msk.f32.vlgmr.msra.gmra.mrb[0].mxu0 %vm636_vm12, %v524_v22 }
 0x35b   : > { %2207 = vperm.xlu0 %3844, %v2082_v46   ;;  %2201 = vperm.xlu1 %3843, %v2080_v3   ;;  %v525_v46 = vld [vmem:[%s517_s1 + $0x10] sm:$0xff] }
 0x35c   : > { %3663 = vmatprep.mubr.msk.f32.mxu0 %vm636_vm12, %v525_v46 }
 0x35f   : > { %2306 = vperm.xlu0 %3844, %v2115_v52   ;;  %v2217_v23 = vpop.permute.xlu0 %2216  ;;  %2198 = vperm.xlu1 %3843, %v2079_v17   ;;  %v2214_v35 = vpop.permute.xlu1 %2213  ;;  %v526_v17 = vld [vmem:[%s517_s1 + $0x18] sm:$0xff]  ;;  %s3594_s1 = sshll.u32 %s3917_s24, 8  ;;  %s5091_s24 = scalar_lea.sflag [#allocation4], %s485_s17 }
 0x360   : > { %v2467_v18 = vrot.slane %v2217_v23, %v4439_v13  ;;  %v2463_v53 = vrot.slane %v2214_v35, %v4434_v24  ;;  %3664 = vmatmul.mubr.msk.f32.gmra.mrb[2].mxu0 %vm636_vm12, %v526_v17  ;;  %s5085_s30 = scalar_lea.hbm %s5149_s12, %s3594_s1 }
 0x362   : > { %v2468_v28 = vsel %vm1560_vm2, %v2467_v18, %v2463_v53 }
 0x363   : > { %v2229_v51 = vpop.permute.xlu0 %2228  ;;  %2210 = vperm.xlu1 %3843, %v2083_v45   ;;  %v2226_v10 = vpop.permute.xlu1 %2225  ;;  %v3845_v45 = vld [vmem:[%s4076_s29] sm:$0xff] }
 0x364   : > { %v2486_v44 = vrot.slane %v2229_v51, %v4439_v13  ;;  %v2482_v40 = vrot.slane %v2226_v10, %v4434_v24  ;;  %3679 = vmatprep.mubr.msk.f32.mxu0 %vm534_vm0, %v3845_v45 }
 0x366   : > { %v2487_v19 = vsel %vm1560_vm2, %v2486_v44, %v2482_v40 }
 0x367   : > { %v2220_v30 = vpop.permute.xlu0 %2219  ;;  %2303 = vperm.xlu1 %3843, %v2114_v33   ;;  %v2232_v9 = vpop.permute.xlu1 %2231 }
 0x368   : > { %v2472_v55 = vrot.slane %v2220_v30, %v4442_v63  ;;  %v2491_v6 = vrot.slane %v2232_v9, %v4442_v63 }
 0x36a   : > { %v2473_v56 = vsel %vm1567_vm3, %v2472_v55, %v2468_v28  ;;  %v2492_v49 = vsel %vm1567_vm3, %v2491_v6, %v2487_v19 }
 0x36b   : > { %v2238_v41 = vpop.permute.xlu0 %2237  ;;  %v2241_v59 = vpop.permute.xlu1 %2240 }
 0x36c   : > { %v2501_v38 = vrot.slane %v2238_v41, %v4434_v24  ;;  %v2505_v54 = vrot.slane %v2241_v59, %v4439_v13 }
 0x36e   : > { %v2506_v62 = vsel %vm1560_vm2, %v2505_v54, %v2501_v38 }
 0x36f   : > { %v2223_v60 = vpop.permute.xlu0 %2222  ;;  %v2235_v32 = vpop.permute.xlu1 %2234 }
 0x370   : > { %v2477_v21 = vrot.slane %v2223_v60, %v4452_v25  ;;  %v2496_v37 = vrot.slane %v2235_v32, %v4452_v25 }
 0x372   : > { %v2478_v58 = vsel %vm1574_vm4, %v2477_v21, %v2473_v56  ;;  %v2497_v47 = vsel %vm1574_vm4, %v2496_v37, %v2492_v49 }
 0x373   : > { %v2619_v1 = vsel %vm1861_vm5, %v2497_v47, %v2478_v58  ;;  %v2244_v61 = vpop.permute.xlu0 %2243  ;;  %v2250_v14 = vpop.permute.xlu1 %2249 }
 0x374   : > { %v2510_v7 = vrot.slane %v2244_v61, %v4442_v63  ;;  %v2520_v12 = vrot.slane %v2250_v14, %v4434_v24 }
 0x376   : > { %v2511_v43 = vsel %vm1567_vm3, %v2510_v7, %v2506_v62 }
 0x377   : > { %v2253_v8 = vpop.permute.xlu0 %2252  ;;  %v2247_v15 = vpop.permute.xlu1 %2246 }
 0x378   : > { %v2524_v20 = vrot.slane %v2253_v8, %v4439_v13  ;;  %v2515_v26 = vrot.slane %v2247_v15, %v4452_v25 }
 0x37a   : > { %v2525_v2 = vsel %vm1560_vm2, %v2524_v20, %v2520_v12  ;;  %v2516_v16 = vsel %vm1574_vm4, %v2515_v26, %v2511_v43 }
 0x37b   : > { %v2620_v3 = vsel %vm1863_vm6, %v2516_v16, %v2619_v1  ;;  %v2256_v27 = vpop.permute.xlu0 %2255  ;;  %v2262_v48 = vpop.permute.xlu1 %2261 }
 0x37c   : > { %v2529_v52 = vrot.slane %v2256_v27, %v4442_v63  ;;  %v2539_v18 = vrot.slane %v2262_v48, %v4434_v24 }
 0x37e   : > { %v2530_v23 = vsel %vm1567_vm3, %v2529_v52, %v2525_v2 }
 0x37f   : > { %v2265_v35 = vpop.permute.xlu0 %2264  ;;  %v2259_v57 = vpop.permute.xlu1 %2258 }
 0x380   : > { %v2543_v53 = vrot.slane %v2265_v35, %v4439_v13  ;;  %v2534_v28 = vrot.slane %v2259_v57, %v4452_v25 }
 0x382   : > { %v2544_v51 = vsel %vm1560_vm2, %v2543_v53, %v2539_v18  ;;  %v2535_v10 = vsel %vm1574_vm4, %v2534_v28, %v2530_v23 }
 0x383   : > { %v2621_v29 = vsel %vm1865_vm7, %v2535_v10, %v2620_v3  ;;  %v2268_v44 = vpop.permute.xlu0 %2267  ;;  %v2274_v40 = vpop.permute.xlu1 %2273 }
 0x384   : > { %v2548_v19 = vrot.slane %v2268_v44, %v4442_v63  ;;  %v2558_v55 = vrot.slane %v2274_v40, %v4434_v24 }
 0x386   : > { %v2549_v33 = vsel %vm1567_vm3, %v2548_v19, %v2544_v51 }
 0x387   : > { %v2277_v30 = vpop.permute.xlu0 %2276  ;;  %v2271_v9 = vpop.permute.xlu1 %2270 }
 0x388   : > { %v2562_v6 = vrot.slane %v2277_v30, %v4439_v13  ;;  %v2553_v56 = vrot.slane %v2271_v9, %v4452_v25 }
 0x38a   : > { %v2563_v49 = vsel %vm1560_vm2, %v2562_v6, %v2558_v55  ;;  %v2554_v41 = vsel %vm1574_vm4, %v2553_v56, %v2549_v33 }
 0x38b   : > { %v2622_v59 = vsel %vm1867_vm8, %v2554_v41, %v2621_v29  ;;  %v2280_v38 = vpop.permute.xlu0 %2279  ;;  %v2286_v54 = vpop.permute.xlu1 %2285 }
 0x38c   : > { %v2567_v62 = vrot.slane %v2280_v38, %v4442_v63  ;;  %v2577_v37 = vrot.slane %v2286_v54, %v4434_v24 }
 0x38e   : > { %v2568_v60 = vsel %vm1567_vm3, %v2567_v62, %v2563_v49 }
 0x38f   : > { %v2289_v32 = vpop.permute.xlu0 %2288  ;;  %v2283_v21 = vpop.permute.xlu1 %2282 }
 0x390   : > { %v2581_v5 = vrot.slane %v2289_v32, %v4439_v13  ;;  %v2572_v39 = vrot.slane %v2283_v21, %v4452_v25 }
 0x392   : > { %v2582_v50 = vsel %vm1560_vm2, %v2581_v5, %v2577_v37  ;;  %v2573_v58 = vsel %vm1574_vm4, %v2572_v39, %v2568_v60 }
 0x393   : > { %v2623_v47 = vsel %vm1869_vm9, %v2573_v58, %v2622_v59  ;;  %v2292_v34 = vpop.permute.xlu0 %2291  ;;  %v2298_v1 = vpop.permute.xlu1 %2297 }
 0x394   : > { %v2586_v31 = vrot.slane %v2292_v34, %v4442_v63  ;;  %v2596_v0 = vrot.slane %v2298_v1, %v4434_v24 }
 0x396   : > { %v2587_v61 = vsel %vm1567_vm3, %v2586_v31, %v2582_v50 }
 0x397   : > { %v2301_v14 = vpop.permute.xlu0 %2300 }
 0x398   : > { %v2600_v7 = vrot.slane %v2301_v14, %v4439_v13 }
 0x39a   : > { %v4847_v4 = vsel %vm1560_vm2, %v2600_v7, %v2596_v0 }
 0x39b   : > { %v2295_v11 = vpop.permute.xlu0 %2294 }
 0x39c   : > { %v2591_v43 = vrot.slane %v2295_v11, %v4452_v25 }
 0x39e   : > { %v2592_v36 = vsel %vm1574_vm4, %v2591_v43, %v2587_v61 }
 0x39f   : > { %v4852_v8 = vsel %vm1871_vm10, %v2592_v36, %v2623_v47 }
 0x3a2   : > { %v2121_v15 = vpop.permute.xlu0 %2120  ;;  %v2118_v12 = vpop.permute.xlu1 %2117 }
 0x3a3   : > { %v2315_v9 = vrot.slane %v2121_v15, %v4439_v13  ;;  %v2311_v55 = vrot.slane %v2118_v12, %v4434_v24 }
 0x3a5   : > { %v2316_v32 = vsel %vm1560_vm2, %v2315_v9, %v2311_v55 }
 0x3a6   : > { %v2133_v20 = vpop.permute.xlu0 %2132  ;;  %v2130_v26 = vpop.permute.xlu1 %2129 }
 0x3a7   : > { %v2334_v40 = vrot.slane %v2133_v20, %v4439_v13  ;;  %v2330_v19 = vrot.slane %v2130_v26, %v4434_v24 }
 0x3a9   : > { %v2335_v62 = vsel %vm1560_vm2, %v2334_v40, %v2330_v19 }
 0x3aa   : > { %v2136_v22 = vpop.permute.xlu0 %2135  ;;  %v2124_v2 = vpop.permute.xlu1 %2123 }
 0x3ab   : > { %v2339_v6 = vrot.slane %v2136_v22, %v4442_v63  ;;  %v2320_v56 = vrot.slane %v2124_v2, %v4442_v63 }
 0x3ad   : > { %v2340_v21 = vsel %vm1567_vm3, %v2339_v6, %v2335_v62  ;;  %v2321_v39 = vsel %vm1567_vm3, %v2320_v56, %v2316_v32 }
 0x3ae   : > { %v2145_v16 = vpop.permute.xlu0 %2144  ;;  %v2142_v46 = vpop.permute.xlu1 %2141 }
 0x3af   : > { %v2353_v49 = vrot.slane %v2145_v16, %v4439_v13  ;;  %v2349_v41 = vrot.slane %v2142_v46, %v4434_v24 }
 0x3b1   : > { %v2354_v50 = vsel %vm1560_vm2, %v2353_v49, %v2349_v41 }
 0x3b2   : > { %v2139_v3 = vpop.permute.xlu0 %2138  ;;  %v2127_v27 = vpop.permute.xlu1 %2126 }
 0x3b3   : > { %v2344_v59 = vrot.slane %v2139_v3, %v4452_v25  ;;  %v2325_v38 = vrot.slane %v2127_v27, %v4452_v25 }
 0x3b5   : > { %v2345_v58 = vsel %vm1574_vm4, %v2344_v59, %v2340_v21  ;;  %v2326_v34 = vsel %vm1574_vm4, %v2325_v38, %v2321_v39 }
 0x3b6   : > { %v2154_v48 = vpop.permute.xlu0 %2153  ;;  %v2148_v52 = vpop.permute.xlu1 %2147 }
 0x3b7   : > { %v2358_v54 = vrot.slane %v2148_v52, %v4442_v63  ;;  %v2368_v31 = vrot.slane %v2154_v48, %v4434_v24 }
 0x3b9   : > { %v2359_v1 = vsel %vm1567_vm3, %v2358_v54, %v2354_v50 }
 0x3ba   : > { %v2151_v17 = vpop.permute.xlu0 %2150  ;;  %v2157_v23 = vpop.permute.xlu1 %2156 }
 0x3bb   : > { %v2372_v37 = vrot.slane %v2157_v23, %v4439_v13  ;;  %v2363_v14 = vrot.slane %v2151_v17, %v4452_v25 }
 0x3bd   : > { %v2373_v36 = vsel %vm1560_vm2, %v2372_v37, %v2368_v31  ;;  %v2364_v17 = vsel %vm1574_vm4, %v2363_v14, %v2359_v1 }
 0x3be   : > { %v2166_v35 = vpop.permute.xlu0 %2165  ;;  %v2160_v57 = vpop.permute.xlu1 %2159 }
 0x3bf   : > { %v2387_v0 = vrot.slane %v2166_v35, %v4434_v24  ;;  %v2377_v7 = vrot.slane %v2160_v57, %v4442_v63 }
 0x3c1   : > { %v2378_v23 = vsel %vm1567_vm3, %v2377_v7, %v2373_v36 }
 0x3c2   : > { %v2172_v18 = vpop.permute.xlu0 %2171  ;;  %v2169_v53 = vpop.permute.xlu1 %2168 }
 0x3c3   : > { %v2391_v47 = vrot.slane %v2169_v53, %v4439_v13  ;;  %v2396_v15 = vrot.slane %v2172_v18, %v4442_v63 }
 0x3c5   : > { %v2392_v26 = vsel %vm1560_vm2, %v2391_v47, %v2387_v0 }
 0x3c6   : > { %v2181_v28 = vpop.permute.xlu0 %2180  ;;  %v2163_v45 = vpop.permute.xlu1 %2162  ;;  %v2397_v53 = vsel %vm1567_vm3, %v2396_v15, %v2392_v26  ;;  %v2812_v26 = vld [vmem:[%s5142_s5] sm:$0x7] }
 0x3c7   : > { %v2410_v12 = vrot.slane %v2181_v28, %v4439_v13  ;;  %v2382_v20 = vrot.slane %v2163_v45, %v4452_v25  ;;  %3677 = vmatprep.subr.msk.mxu0 %vm547_vm11, %v2812_v26 }
 0x3c8   : > { %3678 = vmatpush3.msk.msra.mxu0 %vm547_vm11, %v2812_v26 }
 0x3c9   : > { %v2383_v18 = vsel %vm1574_vm4, %v2382_v20, %v2378_v23 }
 0x3ca   : > { %v2184_v51 = vpop.permute.xlu0 %2183  ;;  %v2178_v10 = vpop.permute.xlu1 %2177 }
 0x3cb   : > { %v2406_v61 = vrot.slane %v2178_v10, %v4434_v24  ;;  %v2415_v22 = vrot.slane %v2184_v51, %v4442_v63  ;;  %v2612_v51 = vsel %vm1861_vm5, %v2345_v58, %v2326_v34  ;;  %vm5331_vm5 = vcmask 261120  }
 0x3cd   : > { %v2411_v46 = vsel %vm1560_vm2, %v2410_v12, %v2406_v61 }
 0x3ce   : > { %v2193_v29 = vpop.permute.xlu0 %2192  ;;  %v2175_v44 = vpop.permute.xlu1 %2174 }
 0x3cf   : > { %v2429_v2 = vrot.slane %v2193_v29, %v4439_v13  ;;  %v2401_v16 = vrot.slane %v2175_v44, %v4452_v25  ;;  %v2613_v44 = vsel %vm1863_vm6, %v2364_v17, %v2612_v51 }
 0x3d1   : > { %v2402_v10 = vsel %vm1574_vm4, %v2401_v16, %v2397_v53 }
 0x3d2   : > { %v2196_v33 = vpop.permute.xlu0 %2195  ;;  %v2190_v30 = vpop.permute.xlu1 %2189 }
 0x3d3   : > { %v2425_v11 = vrot.slane %v2190_v30, %v4434_v24  ;;  %v2434_v3 = vrot.slane %v2196_v33, %v4442_v63 }
 0x3d5   : > { %v2430_v35 = vsel %vm1560_vm2, %v2429_v2, %v2425_v11 }
 0x3d6   : > { %v2187_v60 = vpop.permute.xlu1 %2186  ;;  %v2205_v5 = vpop.permute.xlu0 %2204  ;;  %v2435_v33 = vsel %vm1567_vm3, %v2434_v3, %v2430_v35 }
 0x3d7   : > { %v2420_v27 = vrot.slane %v2187_v60, %v4452_v25  ;;  %v2448_v28 = vrot.slane %v2205_v5, %v4439_v13  ;;  %v2614_v13 = vsel %vm1865_vm7, %v2383_v18, %v2613_v44  ;;  %vm5333_vm7 = vmmov %vm5331_vm5  ;;  %v5342_v44 = vld [vmem:[#allocation61_spill] sm:$0xff] }
 0x3d8   : > { %v2615_v55 = vsel %vm1867_vm8, %v2402_v10, %v2614_v13  ;;  %vm5334_vm8 = vmmov %vm5331_vm5 }
 0x3da   : > { %v2202_v43 = vpop.permute.xlu1 %2201  ;;  %v2208_v48 = vpop.permute.xlu0 %2207 }
 0x3db   : > { %v2444_v52 = vrot.slane %v2202_v43, %v4434_v24  ;;  %v2416_v24 = vsel %vm1567_vm3, %v2415_v22, %v2411_v46  ;;  %v2453_v29 = vrot.slane %v2208_v48, %v4442_v63  ;;  %v3846_v46 = vld [vmem:[%s4076_s29 + $0x8] sm:$0xff]  ;;  %s487_s29 = scalar_lea.vmem [#allocation3], %s3527_s20  ;;  %s3929_s20 = smov [#allocation3]  }
 0x3dc   : > { %v2421_v40 = vsel %vm1574_vm4, %v2420_v27, %v2416_v24  ;;  %3680 = vmatmul.mubr.msk.f32.vlgmr.msra.gmra.mrb[4].mxu0 %vm534_vm0, %v3846_v46  ;;  %s3851_s27 = sshll.u32 %s3929_s20, 4  ;;  %s3852_s27 = int_to_ptr.vmem [resolvable:$false] %s3851_s27 }
 0x3dd   : > { %v2449_v19 = vsel %vm1560_vm2, %v2448_v28, %v2444_v52  ;;  %v2616_v56 = vsel %vm1869_vm9, %v2421_v40, %v2615_v55  ;;  %vm5330_vm2 = vcmask 1047559   ;;  %vm5335_vm9 = vmmov %vm5331_vm5  ;;  %v3928_v28 = vmov 0.0   ;;  %v3052_v55 = vld [vmem:[%s5144_s7 + $0x10] sm:$0xff]  ;;  %s3853_s0 = scalar_lea.vmem %s3852_s27, 512 }
 0x3de   : > { %v2199_v57 = vpop.permute.xlu1 %2198  ;;  %v2454_v49 = vsel %vm1567_vm3, %v2453_v29, %v2449_v19  ;;  %v2307_v41 = vpop.permute.xlu0 %2306  ;;  %vm5332_vm6 = vmmov %vm5330_vm2 }
 0x3df   : > { %v2439_v45 = vrot.slane %v2199_v57, %v4452_v25  ;;  %v2610_v21 = vrot.slane %v2307_v41, %v4452_v25  ;;  %v5338_v57 = vld [vmem:[#allocation7_spill] sm:$0xff] }
 0x3e1   : > { %v2440_v30 = vsel %vm1574_vm4, %v2439_v45, %v2435_v33  ;;  %v3051_v33 = vld [vmem:[%s5144_s7 + $0x8] sm:$0xff] }
 0x3e2   : > { %v2211_v9 = vpop.permute.xlu1 %2210  ;;  %v2617_v59 = vsel %vm1871_vm10, %v2440_v30, %v2616_v56 }
 0x3e3   : > { %v2458_v6 = vrot.slane %v2211_v9, %v4452_v25 }
 0x3e5   : > { %v2459_v38 = vsel %vm1574_vm4, %v2458_v6, %v2454_v49  ;;  %v3053_v6 = vld [vmem:[%s5144_s7 + $0x18] sm:$0xff] }
 0x3e6   : > { %v2304_v54 = vpop.permute.xlu1 %2303  ;;  %v2618_v62 = vsel %vm5330_vm2, %v2459_v38, %v2617_v59  ;;  %v3766_v56 = vpack.c.bf16 %v3053_v6, %v3052_v55 }
 0x3e7   : > { %v2605_v60 = vrot.slane %v2304_v54, %v4442_v63  ;;  %v2626_v32 = vsel %vm5331_vm5, %v2618_v62, 2147483647 }
 0x3e8   : > { %v2628_v37 = vshra.s32 %v2626_v32, 16  ;;  %v2627_v61 = vand.u32 65535, %v2626_v32 }
 0x3e9   : > { %v2606_v5 = vsel %vm1567_vm3, %v2605_v60, %v4847_v4  ;;  %vm5336_vm3 = vmmov %vm5331_vm5 }
 0x3ea   : > { %v2611_v39 = vsel %vm1574_vm4, %v2610_v21, %v2606_v5  ;;  %v2630_v50 = vcvt.s32.f32 %v2628_v37  ;;  %vm5337_vm4 = vmmov %vm5336_vm3  ;;  %v2629_v14 = vcvt.s32.f32 %v2627_v61  ;;  %v3562_v5 = vld [vmem:[%s5143_s6] ss:$0 sm:$0xff] }
 0x3eb   : > { %v2625_v58 = vsel %vm5332_vm6, %v2611_v39, %v4852_v8  ;;  %vm5339_vm1 = vmmov %vm5336_vm3 }
 0x3ec   : > { %2631 = vmin.xlane.f32.xlu1 %v2630_v50  ;;  %v2641_v47 = vsel %vm5333_vm7, %v2625_v58, 2147483647  ;;  %vm5340_vm0 = vmmov %vm5339_vm1 }
 0x3ed   : > { %v2643_v34 = vshra.s32 %v2641_v47, 16  ;;  %v2642_v0 = vand.u32 65535, %v2641_v47  ;;  %vm5341_vm12 = vmmov %vm5340_vm0 }
 0x3ee   : > { %vm5343_vm5 = vmmov %vm5340_vm0 }
 0x3ef   : > { %v2645_v31 = vcvt.s32.f32 %v2643_v34  ;;  %v2644_v43 = vcvt.s32.f32 %v2642_v0  ;;  %vm5344_vm7 = vmmov %vm5340_vm0 }
 0x3f1   : > { %2646 = vmin.xlane.f32.xlu0 %v2645_v31 }
 0x42b   : > { %v3662_v63 = vpop.f32.mrb[0].mxu0 }
 0x42c   : > { %736 = vst.msk [vmem:[#allocation2 + $0x8] sm:$0xff] %vm5334_vm8, %v3662_v63  ;;  %v715_v25 = vpop.f32.mrb[1].mxu0 }
 0x42d   : > { %735 = vst.msk [vmem:[#allocation2] sm:$0xff] %vm5335_vm9, %v715_v25  ;;  %vm5345_vm9 = vmmov %vm5340_vm0 }
 0x433   : > { %v3665_v1 = vpop.f32.mrb[2].mxu0  ;;  %v2902_v12 = vld [vmem:[#allocation2 + $0x8] sm:$0xff] }
 0x434   : > { %738 = vst.msk [vmem:[#allocation2 + $0x18] sm:$0xff] %vm5336_vm3, %v3665_v1  ;;  %v725_v4 = vpop.f32.mrb[3].mxu0  ;;  %v2901_v15 = vld [vmem:[#allocation2] sm:$0xff]  ;;  %vm5346_vm3 = vmmov %vm5340_vm0 }
 0x435   : > { %737 = vst.msk [vmem:[#allocation2 + $0x10] sm:$0xff] %vm5337_vm4, %v725_v4  ;;  %v3754_v20 = vpack.c.bf16 %v2902_v12, %v2901_v15  ;;  %vm5347_vm4 = vmmov %vm5340_vm0 }
 0x437   : > { %3755 = vmatprep.subr.bf16.mxu1 %v3754_v20 }
 0x438   : > { %3757 = vmatpush3.bf16.msra.mxu1 %v3754_v20 }
 0x43b   : > { %v2904_v2 = vld [vmem:[#allocation2 + $0x18] sm:$0xff] }
 0x43c   : > { %v2903_v22 = vld [vmem:[#allocation2 + $0x10] sm:$0xff] }
 0x43d   : > { %v3758_v16 = vpack.c.bf16 %v2904_v2, %v2903_v22 }
 0x43f   : > { %3759 = vmatprep.subr.bf16.mxu1 %v3758_v16 }
 0x440   : > { %3761 = vmatpush3.bf16.msra.mxu1 %v3758_v16 }
 0x479   : > { %v2632_v8 = vpop.xlane.xlu1 %2631 }
 0x47a   : > { %vm2633_vm10 = vcmp.eq.f32.partialorder %v2630_v50, %v2632_v8  ;;  %v2638_v3 = vcvt.f32.s32 %v2632_v8 }
 0x47b   : > { %v2634_v7 = vsel %vm2633_vm10, %v2629_v14, inf }
 0x47c   : > { %2635 = vmin.xlane.f32.xlu0 %v2634_v7  ;;  %v2639_v48 = vshll.u32 %v2638_v3, 16 }
 0x47e   : > { %v2647_v11 = vpop.xlane.xlu0 %2646 }
 0x47f   : > { %vm2648_vm13 = vcmp.eq.f32.partialorder %v2645_v31, %v2647_v11  ;;  %v2653_v17 = vcvt.f32.s32 %v2647_v11 }
 0x480   : > { %v2649_v36 = vsel %vm2648_vm13, %v2644_v43, inf }
 0x481   : > { %2650 = vmin.xlane.f32.xlu0 %v2649_v36  ;;  %v2654_v18 = vshll.u32 %v2653_v17, 16 }
 0x4af   : > { %v3681_v30 = vpop.f32.mrb[4].mxu0 }
 0x4b0   : > { %v2883_v9 = vpop.f32.mrb[5].mxu0  ;;  %v4974_v39 = vsub.f32 %v3681_v30, %v3562_v5 }
 0x4b1   : > { %v4976_v50 = vsub.f32 %v2883_v9, %v3562_v5 }
 0x509   : > { %v2636_v27 = vpop.xlane.xlu0 %2635 }
 0x50a   : > { %v2637_v52 = vcvt.f32.s32 %v2636_v27 }
 0x50c   : > { %v2640_v23 = vadd.s32 %v2639_v48, %v2637_v52 }
 0x50e   : > { %v2651_v35 = vpop.xlane.xlu0 %2650  ;;  %vm2656_vm14 = vcmp.eq.s32.totalorder %v5338_v57, %v2640_v23 }
 0x50f   : > { %v2652_v53 = vcvt.f32.s32 %v2651_v35  ;;  %v3551_v45 = vsel %vm2656_vm14, 1.0, %v3928_v28 }
 0x510   : > { %vm2662_vm15 = vcmp.gt.f32.partialorder %v3551_v45, 0.0  ;;  %3690 = vmatprep.mubr.msk.f32.mxu1 %vm5339_vm1, %v3551_v45  ;;  %vm5348_vm1 = vmmov %vm5340_vm0 }
 0x511   : > { %v2655_v51 = vadd.s32 %v2654_v18, %v2652_v53  ;;  %v4941_v10 = vsel %vm2662_vm15, inf, %v4588_v42  ;;  %v3050_v42 = vld [vmem:[%s5144_s7] sm:$0xff] }
 0x512   : > { %v2666_v24 = vsel %vm5340_vm0, %v4941_v10, inf  ;;  %v3762_v13 = vpack.c.bf16 %v3051_v33, %v3050_v42 }
 0x513   : > { %vm2657_vm11 = vcmp.eq.s32.totalorder %v5338_v57, %v2655_v51  ;;  %2667 = vmin.xlane.f32.xlu1 %v2666_v24 }
 0x514   : > { %v3552_v29 = vsel %vm2657_vm11, 1.0, %v3928_v28  ;;  %3763 = vmatprep.subr.bf16.mxu0 %v3762_v13 }
 0x515   : > { %3691 = vmatmul.mubr.msk.f32.vlgmr.msra.gmra.mrb[2].mxu1 %vm5341_vm12, %v3552_v29  ;;  %vm2663_vm2 = vcmp.gt.f32.partialorder %v3552_v29, 0.0  ;;  %3765 = vmatpush3.bf16.msra.mxu0 %v3762_v13 }
 0x516   : > { %v4949_v40 = vsel %vm2663_vm2, inf, %v5342_v44  ;;  %3767 = vmatprep.subr.bf16.mxu0 %v3766_v56  ;;  %vm5349_vm2 = vmmov %vm5340_vm0 }
 0x517   : > { %v2669_v19 = vsel %vm5343_vm5, %v4949_v40, inf  ;;  %vm5350_vm5 = vmmov %vm5340_vm0 }
 0x518   : > { %2670 = vmin.xlane.f32.xlu0 %v2669_v19 }
 0x519   : > { %3769 = vmatpush3.bf16.msra.mxu0 %v3766_v56 }
 0x5a0   : > { %v2668_v49 = vpop.xlane.xlu1 %2667 }
 0x5a1   : > { %vm2672_vm6 = vcmp.eq.f32.partialorder %v4941_v10, %v2668_v49 }
 0x5a2   : > { %v2674_v41 = vsel %vm2672_vm6, %v5338_v57, 32 }
 0x5a3   : > { %v2676_v59 = vsel %vm5344_vm7, %v2674_v41, 2147483647  ;;  %vm5351_vm7 = vmmov %vm5340_vm0 }
 0x5a4   : > { %v2678_v38 = vshra.s32 %v2676_v59, 16  ;;  %v2677_v1 = vand.u32 65535, %v2676_v59 }
 0x5a5   : > { %v2671_v54 = vpop.xlane.xlu0 %2670 }
 0x5a6   : > { %vm2673_vm8 = vcmp.eq.f32.partialorder %v4949_v40, %v2671_v54  ;;  %v2680_v62 = vcvt.s32.f32 %v2678_v38  ;;  %v2679_v61 = vcvt.s32.f32 %v2677_v1 }
 0x5a7   : > { %v2675_v60 = vsel %vm2673_vm8, %v5338_v57, 32 }
 0x5a8   : > { %v2691_v32 = vsel %vm5345_vm9, %v2675_v60, 2147483647  ;;  %2681 = vmin.xlane.f32.xlu1 %v2680_v62  ;;  %vm5352_vm9 = vmmov %vm5340_vm0 }
 0x5a9   : > { %v2693_v21 = vshra.s32 %v2691_v32, 16  ;;  %v2692_v8 = vand.u32 65535, %v2691_v32  ;;  %v5011_v32 = vld [vmem:[%s5145_s8] ss:$0 sm:$0xff] }
 0x5ab   : > { %v2695_v37 = vcvt.s32.f32 %v2693_v21  ;;  %v2694_v7 = vcvt.s32.f32 %v2692_v8 }
 0x5ad   : > { %2696 = vmin.xlane.f32.xlu0 %v2695_v37 }
 0x5e8   : > { %v3692_v58 = vpop.f32.mrb[2].mxu1 }
 0x5e9   : > { %v3035_v47 = vsub.f32 %v3692_v58, %v4974_v39  ;;  %v2995_v34 = vpop.f32.mrb[3].mxu1 }
 0x5ea   : > { %v3034_v31 = vsub.f32 %v2995_v34, %v4976_v50 }
 0x5eb   : > { %v3043_v25 = vmax.f32 %v3035_v47, 0.0 }
 0x5ec   : > { %v3042_v63 = vmax.f32 %v3034_v31, 0.0 }
 0x5ee   : > { %3710 = vmatprep.mubr.msk.f32.mxu0 %vm5346_vm3, %v3042_v63  ;;  %vm5353_vm3 = vmmov %vm5340_vm0 }
 0x5ef   : > { %3711 = vmatmul.mubr.msk.f32.vlgmr.msra.gmra.mrb[6].mxu0 %vm5347_vm4, %v3043_v25  ;;  %vm5354_vm4 = vmmov %vm5340_vm0 }
 0x635   : > { %v2682_v4 = vpop.xlane.xlu1 %2681 }
 0x636   : > { %vm2683_vm10 = vcmp.eq.f32.partialorder %v2680_v62, %v2682_v4  ;;  %v2688_v43 = vcvt.f32.s32 %v2682_v4 }
 0x637   : > { %v2684_v14 = vsel %vm2683_vm10, %v2679_v61, inf }
 0x638   : > { %2685 = vmin.xlane.f32.xlu1 %v2684_v14  ;;  %v2689_v20 = vshll.u32 %v2688_v43, 16 }
 0x63a   : > { %v2697_v0 = vpop.xlane.xlu0 %2696 }
 0x63b   : > { %vm2698_vm13 = vcmp.eq.f32.partialorder %v2695_v37, %v2697_v0  ;;  %v2703_v22 = vcvt.f32.s32 %v2697_v0 }
 0x63c   : > { %v2699_v11 = vsel %vm2698_vm13, %v2694_v7, inf }
 0x63d   : > { %2700 = vmin.xlane.f32.xlu0 %v2699_v11  ;;  %v2704_v46 = vshll.u32 %v2703_v22, 16 }
 0x6c2   : > { %v3712_v36 = vpop.f32.mrb[6].mxu0 }
 0x6c3   : > { %v3151_v15 = vpop.f32.mrb[7].mxu0  ;;  %v3157_v21 = vadd.f32 %v3712_v36, %v5011_v32 }
 0x6c4   : > { %v3152_v37 = vadd.f32 %v5011_v32, %v3151_v15 }
 0x6c5   : > { %v2686_v12 = vpop.xlane.xlu1 %2685  ;;  %v3191_v63 = vmax.f32 %v3157_v21, 0.0 }
 0x6c6   : > { %v2687_v26 = vcvt.f32.s32 %v2686_v12  ;;  %v3190_v4 = vmax.f32 %v3152_v37, 0.0 }
 0x6c8   : > { %v2690_v2 = vadd.s32 %v2689_v20, %v2687_v26 }
 0x6ca   : > { %v2701_v16 = vpop.xlane.xlu0 %2700  ;;  %vm2706_vm14 = vcmp.eq.s32.totalorder %v5338_v57, %v2690_v2 }
 0x6cb   : > { %v2702_v3 = vcvt.f32.s32 %v2701_v16  ;;  %v3553_v27 = vsel %vm2706_vm14, 1.0, %v3928_v28 }
 0x6cc   : > { %vm2712_vm15 = vcmp.gt.f32.partialorder %v3553_v27, 0.0  ;;  %3693 = vmatprep.mubr.msk.f32.mxu1 %vm5348_vm1, %v3553_v27 }
 0x6cd   : > { %v2705_v48 = vadd.s32 %v2704_v46, %v2702_v3  ;;  %v4986_v52 = vsel %vm2712_vm15, inf, %v4941_v10  ;;  %vm5355_vm15 = vmmov %vm5340_vm0 }
 0x6ce   : > { %v2716_v17 = vsel %vm5340_vm0, %v4986_v52, inf }
 0x6cf   : > { %2717 = vmin.xlane.f32.xlu1 %v2716_v17  ;;  %vm2707_vm11 = vcmp.eq.s32.totalorder %v5338_v57, %v2705_v48 }
 0x6d0   : > { %v3554_v23 = vsel %vm2707_vm11, 1.0, %v3928_v28 }
 0x6d1   : > { %vm2713_vm12 = vcmp.gt.f32.partialorder %v3554_v23, 0.0  ;;  %3694 = vmatmul.mubr.msk.f32.gmra.mrb[4].mxu1 %vm5349_vm2, %v3554_v23 }
 0x6d2   : > { %v4994_v35 = vsel %vm2713_vm12, inf, %v4949_v40  ;;  %vm5356_vm12 = vmmov %vm5340_vm0 }
 0x6d3   : > { %v2719_v18 = vsel %vm5350_vm5, %v4994_v35, inf  ;;  %vm5357_vm5 = vmmov %vm5340_vm0 }
 0x6d4   : > { %2720 = vmin.xlane.f32.xlu0 %v2719_v18 }
 0x75c   : > { %v2718_v53 = vpop.xlane.xlu1 %2717 }
 0x75d   : > { %vm2722_vm6 = vcmp.eq.f32.partialorder %v4986_v52, %v2718_v53 }
 0x75e   : > { %v2724_v45 = vsel %vm2722_vm6, %v5338_v57, 32 }
 0x75f   : > { %v2726_v51 = vsel %vm5351_vm7, %v2724_v45, 2147483647  ;;  %vm5358_vm7 = vmmov %vm5340_vm0 }
 0x760   : > { %v2728_v10 = vshra.s32 %v2726_v51, 16  ;;  %v2727_v56 = vand.u32 65535, %v2726_v51 }
 0x761   : > { %v2721_v24 = vpop.xlane.xlu0 %2720 }
 0x762   : > { %vm2723_vm8 = vcmp.eq.f32.partialorder %v4994_v35, %v2721_v24  ;;  %v2730_v29 = vcvt.s32.f32 %v2728_v10  ;;  %v2729_v41 = vcvt.s32.f32 %v2727_v56 }
 0x763   : > { %v2725_v44 = vsel %vm2723_vm8, %v5338_v57, 32 }
 0x764   : > { %v2741_v40 = vsel %vm5352_vm9, %v2725_v44, 2147483647  ;;  %2731 = vmin.xlane.f32.xlu1 %v2730_v29  ;;  %vm5359_vm9 = vmmov %vm5340_vm0 }
 0x765   : > { %v2743_v19 = vshra.s32 %v2741_v40, 16  ;;  %v2742_v59 = vand.u32 65535, %v2741_v40 }
 0x767   : > { %v2745_v42 = vcvt.s32.f32 %v2743_v19  ;;  %v2744_v62 = vcvt.s32.f32 %v2742_v59 }
 0x769   : > { %2746 = vmin.xlane.f32.xlu0 %v2745_v42 }
 0x7a4   : > { %v3695_v33 = vpop.f32.mrb[4].mxu1 }
 0x7a5   : > { %v3037_v13 = vsub.f32 %v3695_v33, %v4974_v39  ;;  %v3005_v30 = vpop.f32.mrb[5].mxu1 }
 0x7a6   : > { %v3036_v9 = vsub.f32 %v3005_v30, %v4976_v50 }
 0x7a7   : > { %v3045_v6 = vmax.f32 %v3037_v13, 0.0 }
 0x7a8   : > { %v3044_v55 = vmax.f32 %v3036_v9, 0.0 }
 0x7aa   : > { %3713 = vmatprep.mubr.msk.f32.mxu0 %vm5353_vm3, %v3044_v55  ;;  %vm5360_vm3 = vmmov %vm5340_vm0 }
 0x7ab   : > { %3714 = vmatmul.mubr.msk.f32.gmra.mrb[8].mxu0 %vm5354_vm4, %v3045_v6  ;;  %vm5361_vm4 = vmmov %vm5340_vm0 }
 0x7f1   : > { %v2732_v49 = vpop.xlane.xlu1 %2731 }
 0x7f2   : > { %vm2733_vm10 = vcmp.eq.f32.partialorder %v2730_v29, %v2732_v49  ;;  %v2738_v5 = vcvt.f32.s32 %v2732_v49 }
 0x7f3   : > { %v2734_v38 = vsel %vm2733_vm10, %v2729_v41, inf }
 0x7f4   : > { %2735 = vmin.xlane.f32.xlu1 %v2734_v38  ;;  %v2739_v61 = vshll.u32 %v2738_v5, 16 }
 0x7f6   : > { %v2747_v54 = vpop.xlane.xlu0 %2746 }
 0x7f7   : > { %vm2748_vm13 = vcmp.eq.f32.partialorder %v2745_v42, %v2747_v54  ;;  %v2753_v0 = vcvt.f32.s32 %v2747_v54 }
 0x7f8   : > { %v2749_v60 = vsel %vm2748_vm13, %v2744_v62, inf }
 0x7f9   : > { %2750 = vmin.xlane.f32.xlu0 %v2749_v60  ;;  %v2754_v15 = vshll.u32 %v2753_v0, 16  ;;  %v3204_v0 = vld [vmem:[%s5146_s9] sm:$0xff] }
 0x87e   : > { %v3715_v58 = vpop.f32.mrb[8].mxu0 }
 0x87f   : > { %v3167_v47 = vadd.f32 %v3715_v58, %v5011_v32  ;;  %v3161_v34 = vpop.f32.mrb[9].mxu0 }
 0x880   : > { %v3162_v31 = vadd.f32 %v5011_v32, %v3161_v34 }
 0x881   : > { %v3193_v25 = vmax.f32 %v3167_v47, 0.0  ;;  %v2736_v1 = vpop.xlane.xlu1 %2735 }
 0x882   : > { %v3192_v8 = vmax.f32 %v3162_v31, 0.0  ;;  %v2737_v14 = vcvt.f32.s32 %v2736_v1 }
 0x883   : > { %v5017_v7 = vmax.f32 %v3191_v63, %v3193_v25 }
 0x884   : > { %v5019_v11 = vmax.f32 %v3190_v4, %v3192_v8  ;;  %v2740_v43 = vadd.s32 %v2739_v61, %v2737_v14  ;;  %v3208_v14 = vld [vmem:[%s5147_s10] sm:$0xff] }
 0x885   : > { %3722 = vmatprep.subr.mxu0 %v3208_v14 }
 0x886   : > { %v2751_v36 = vpop.xlane.xlu0 %2750  ;;  %vm2756_vm14 = vcmp.eq.s32.totalorder %v5338_v57, %v2740_v43  ;;  %3723 = vmatpush3.msra.mxu0 %v3208_v14 }
 0x887   : > { %v2752_v12 = vcvt.f32.s32 %v2751_v36  ;;  %v3555_v20 = vsel %vm2756_vm14, 1.0, %v3928_v28 }
 0x888   : > { %3696 = vmatprep.mubr.msk.f32.mxu1 %vm5355_vm15, %v3555_v20  ;;  %vm2762_vm1 = vcmp.gt.f32.partialorder %v3555_v20, 0.0  ;;  %vm5362_vm15 = vmmov %vm5340_vm0  ;;  %v746_v20 = vld [vmem:[%s511_s18 + $0x8] sm:$0xff] }
 0x889   : > { %v2755_v26 = vadd.s32 %v2754_v15, %v2752_v12  ;;  %v2764_v22 = vsel %vm2762_vm1, inf, %v4986_v52 }
 0x88a   : > { %v2766_v2 = vsel %vm5340_vm0, %v2764_v22, inf }
 0x88b   : > { %2767 = vmin.xlane.f32.xlu1 %v2766_v2  ;;  %vm2757_vm11 = vcmp.eq.s32.totalorder %v5338_v57, %v2755_v26  ;;  %v3206_v26 = vld [vmem:[%s5146_s9 + $0x10] sm:$0xff] }
 0x88c   : > { %v3556_v16 = vsel %vm2757_vm11, 1.0, %v3928_v28  ;;  %vm5363_vm11 = vmmov %vm5340_vm0 }
 0x88d   : > { %3697 = vmatmul.mubr.msk.f32.gmra.mrb[6].mxu1 %vm5356_vm12, %v3556_v16  ;;  %vm2763_vm2 = vcmp.gt.f32.partialorder %v3556_v16, 0.0  ;;  %vm5364_vm12 = vmmov %vm5340_vm0 }
 0x88e   : > { %v2765_v46 = vsel %vm2763_vm2, inf, %v4994_v35  ;;  %vm3209_vm2 = vcmask 64512  }
 0x88f   : > { %v2769_v3 = vsel %vm5357_vm5, %v2765_v46, inf  ;;  %vm5366_vm5 = vmmov %vm5340_vm0 }
 0x890   : > { %2770 = vmin.xlane.f32.xlu0 %v2769_v3 }
 0x918   : > { %v2768_v27 = vpop.xlane.xlu1 %2767 }
 0x919   : > { %vm2772_vm6 = vcmp.eq.f32.partialorder %v2764_v22, %v2768_v27  ;;  %v745_v22 = vld [vmem:[%s511_s18] sm:$0xff]  ;;  %s3401_s18 = sshll.u32 %s487_s29, 4  ;;  %s5087_s18 = int_to_ptr.vmem [resolvable:$true] %s3401_s18 }
 0x91a   : > { %v2774_v48 = vsel %vm2772_vm6, %v5338_v57, 32  ;;  %vm5367_vm6 = vmmov %vm5340_vm0  ;;  %s3847_s14 = scalar_lea.vmem %s5087_s18, 256  ;;  %p3854_p1 = scmp.lt.s32.totalorder %s5087_s18, %s3852_s27 }
 0x91b   : > { %v2776_v52 = vsel %vm5358_vm7, %v2774_v48, 2147483647  ;;  %vm5368_vm7 = vmmov %vm5340_vm0  ;;  %p3848_p12 = scmp.ne.s32.totalorder %s5087_s18, %s3847_s14  ;;  %p3855_p2 = scmp.lt.s32.totalorder %s3853_s0, %s3847_s14 }
 0x91c   : > { %v2778_v17 = vshra.s32 %v2776_v52, 16  ;;  %v2777_v42 = vand.u32 65535, %v2776_v52 }
 0x91d   : > { %v2771_v23 = vpop.xlane.xlu0 %2770  ;;  %p3849_p13 = pnand %p3848_p12, %p4037_p4  ;;  %p3856_p3 = por %p3855_p2, %p3854_p1 }
 0x91e   : > { %vm2773_vm8 = vcmp.eq.f32.partialorder %v2765_v46, %v2771_v23  ;;  %v2780_v18 = vcvt.s32.f32 %v2778_v17  ;;  %v2779_v13 = vcvt.s32.f32 %v2777_v42 }
 0x91f   : > { %v2775_v53 = vsel %vm2773_vm8, %v5338_v57, 32  ;;  %vm5369_vm8 = vmmov %vm5340_vm0  ;;  %p3850_p0 = pneg %p3849_p13 }
 0x920   : > { %v2791_v45 = vsel %vm5359_vm9, %v2775_v53, 2147483647  ;;  %2781 = vmin.xlane.f32.xlu1 %v2780_v18 }
 0x921   : > { %v2793_v51 = vshra.s32 %v2791_v45, 16  ;;  %v2792_v30 = vand.u32 65535, %v2791_v45  ;;  %v3584_v45 = vld [vmem:[%s5148_s11] ss:$0 sm:$0xff]  ;;  %p3857_p5 = pnand %p3856_p3, %p3850_p0 }
 0x923   : > { %v2795_v35 = vcvt.s32.f32 %v2793_v51  ;;  %v2794_v6 = vcvt.s32.f32 %v2792_v30 }
 0x925   : > { %2796 = vmin.xlane.f32.xlu0 %v2795_v35 }
 0x960   : > { %v3698_v10 = vpop.f32.mrb[6].mxu1 }
 0x961   : > { %v3039_v24 = vsub.f32 %v3698_v10, %v4974_v39  ;;  %v3015_v29 = vpop.f32.mrb[7].mxu1 }
 0x962   : > { %v3038_v44 = vsub.f32 %v3015_v29, %v4976_v50 }
 0x963   : > { %v3047_v19 = vmax.f32 %v3039_v24, 0.0 }
 0x964   : > { %v3046_v40 = vmax.f32 %v3038_v44, 0.0 }
 0x966   : > { %3716 = vmatprep.mubr.msk.f32.mxu0 %vm5360_vm3, %v3046_v40 }
 0x967   : > { %3717 = vmatmul.mubr.msk.f32.gmra.mrb[10].mxu0 %vm5361_vm4, %v3047_v19 }
 0x9ad   : > { %v2782_v33 = vpop.xlane.xlu1 %2781 }
 0x9ae   : > { %vm2783_vm10 = vcmp.eq.f32.partialorder %v2780_v18, %v2782_v33  ;;  %v2788_v49 = vcvt.f32.s32 %v2782_v33 }
 0x9af   : > { %v2784_v9 = vsel %vm2783_vm10, %v2779_v13, inf }
 0x9b0   : > { %2785 = vmin.xlane.f32.xlu1 %v2784_v9  ;;  %v2789_v21 = vshll.u32 %v2788_v49, 16 }
 0x9b2   : > { %v2797_v55 = vpop.xlane.xlu0 %2796 }
 0x9b3   : > { %vm2798_vm13 = vcmp.eq.f32.partialorder %v2795_v35, %v2797_v55  ;;  %v2803_v58 = vcvt.f32.s32 %v2797_v55 }
 0x9b4   : > { %v2799_v56 = vsel %vm2798_vm13, %v2794_v6, inf }
 0x9b5   : > { %2800 = vmin.xlane.f32.xlu0 %v2799_v56  ;;  %v2804_v25 = vshll.u32 %v2803_v58, 16 }
 0xa3a   : > { %v3718_v41 = vpop.f32.mrb[10].mxu0 }
 0xa3b   : > { %v3177_v59 = vadd.f32 %v3718_v41, %v5011_v32  ;;  %v3171_v38 = vpop.f32.mrb[11].mxu0 }
 0xa3c   : > { %v3172_v54 = vadd.f32 %v5011_v32, %v3171_v38 }
 0xa3d   : > { %v3195_v62 = vmax.f32 %v3177_v59, 0.0  ;;  %v2786_v60 = vpop.xlane.xlu1 %2785 }
 0xa3e   : > { %v3194_v37 = vmax.f32 %v3172_v54, 0.0  ;;  %v2787_v5 = vcvt.f32.s32 %v2786_v60 }
 0xa3f   : > { %v3201_v47 = vmax.f32 %v5017_v7, %v3195_v62  ;;  %v3205_v7 = vld [vmem:[%s5146_s9 + $0x8] sm:$0xff] }
 0xa40   : > { %v3200_v34 = vmax.f32 %v5019_v11, %v3194_v37  ;;  %v2790_v31 = vadd.s32 %v2789_v21, %v2787_v5  ;;  %v3770_v11 = vpack.c.bf16 %v3205_v7, %v3204_v0 }
 0xa42   : > { %vm2806_vm14 = vcmp.eq.s32.totalorder %v5338_v57, %v2790_v31  ;;  %v2801_v63 = vpop.xlane.xlu0 %2800  ;;  %3771 = vmatprep.subr.bf16.mxu1 %v3770_v11 }
 0xa43   : > { %v2802_v1 = vcvt.f32.s32 %v2801_v63  ;;  %v3557_v4 = vsel %vm2806_vm14, 1.0, %v3928_v28  ;;  %3773 = vmatpush3.bf16.msra.mxu1 %v3770_v11 }
 0xa44   : > { %3699 = vmatprep.mubr.msk.f32.mxu1 %vm5362_vm15, %v3557_v4 }
 0xa45   : > { %v2805_v61 = vadd.s32 %v2804_v25, %v2802_v1 }
 0xa47   : > { %vm2807_vm1 = vcmp.eq.s32.totalorder %v5338_v57, %v2805_v61 }
 0xa48   : > { %v3558_v8 = vsel %vm2807_vm1, 1.0, %v3928_v28 }
 0xa49   : > { %3700 = vmatmul.mubr.msk.f32.gmra.mrb[8].mxu1 %vm5340_vm0, %v3558_v8 }
 0xb1c   : > { %v3701_v57 = vpop.f32.mrb[8].mxu1 }
 0xb1d   : > { %v3041_v28 = vsub.f32 %v3701_v57, %v4974_v39  ;;  %v3025_v43 = vpop.f32.mrb[9].mxu1  ;;  %v3207_v39 = vld [vmem:[%s5146_s9 + $0x18] sm:$0xff] }
 0xb1e   : > { %v3040_v36 = vsub.f32 %v3025_v43, %v4976_v50  ;;  %v3774_v50 = vpack.c.bf16 %v3207_v39, %v3206_v26 }
 0xb1f   : > { %v3049_v12 = vmax.f32 %v3041_v28, 0.0 }
 0xb20   : > { %v3048_v15 = vmax.f32 %v3040_v36, 0.0  ;;  %3775 = vmatprep.subr.bf16.mxu1 %v3774_v50 }
 0xb21   : > { %3777 = vmatpush3.bf16.msra.mxu1 %v3774_v50 }
 0xb22   : > { %3719 = vmatprep.mubr.msk.f32.mxu0 %vm5363_vm11, %v3048_v15 }
 0xb23   : > { %3720 = vmatmul.mubr.msk.f32.gmra.mrb[12].mxu0 %vm5364_vm12, %v3049_v12 }
 0xb24   : > { %3724 = vmatprep.mubr.msk.f32.mxu0 %vm3209_vm2, %v745_v22 }
 0xb27   : > { %3725 = vmatmul.mubr.msk.f32.vlgmr.msra.gmra.mrb[14].mxu0 %vm3209_vm2, %v746_v20 }
 0xbf6   : > { %v3721_v2 = vpop.f32.mrb[12].mxu0 }
 0xbf7   : > { %v3187_v16 = vadd.f32 %v3721_v2, %v5011_v32  ;;  %v3181_v46 = vpop.f32.mrb[13].mxu0 }
 0xbf8   : > { %v3182_v3 = vadd.f32 %v5011_v32, %v3181_v46 }
 0xbf9   : > { %v3197_v27 = vmax.f32 %v3187_v16, 0.0 }
 0xbfa   : > { %v3196_v48 = vmax.f32 %v3182_v3, 0.0  ;;  %v3726_v23 = vpop.f32.mrb[14].mxu0 }
 0xbfb   : > { %v3203_v52 = vmax.f32 %v3201_v47, %v3197_v27  ;;  %v3282_v18 = vpop.f32.mrb[15].mxu0 }
 0xbfc   : > { %v3202_v17 = vmax.f32 %v3200_v34, %v3196_v48 }
 0xbfe   : > { %3735 = vmatprep.mubr.msk.f32.mxu1 %vm5366_vm5, %v3202_v17 }
 0xbff   : > { %3736 = vmatmul.mubr.msk.f32.vlgmr.msra.gmra.mrb[10].mxu1 %vm5367_vm6, %v3203_v52 }
 0xcd2   : > { %v3737_v53 = vpop.f32.mrb[10].mxu1 }
 0xcd3   : > { %v3369_v51 = vadd.f32 %v3737_v53, %v3726_v23  ;;  %v3363_v32 = vpop.f32.mrb[11].mxu1 }
 0xcd4   : > { %v3364_v35 = vadd.f32 %v3363_v32, %v3282_v18 }
 0xcd5   : > { %v3380_v10 = vadd.f32 %v3584_v45, %v3369_v51 }
 0xcd6   : > { %v3379_v24 = vadd.f32 %v3584_v45, %v3364_v35 }
 0xcd7   : > { %v3382_v29 = vmax.f32 %v3380_v10, 0.0 }
 0xcd8   : > { %v3381_v44 = vmax.f32 %v3379_v24, 0.0 }
 0xcd9   : > { %3384 = vst.msk [vmem:[%s487_s29 + $0x8] sm:$0xff] %vm5368_vm7, %v3382_v29 }
 0xcda   : > { %3383 = vst.msk [vmem:[%s487_s29] sm:$0xff] %vm5369_vm8, %v3381_v44 }
 0xcdb   : > { %3860 = shalt.err (!%p3857_p5)
}
 0xcdc   : > { %s3861_s17 = scalar_lea.hbm %s5085_s30, 256  ;;  %s3865_s19 = scalar_lea.hbm %s5149_s12, 512 }
 0xcdd   : > { %p3862_p6 = scmp.ne.s32.totalorder %s5085_s30, %s3861_s17  ;;  %p3866_p10 = scmp.lt.u32.totalorder %s5085_s30, %s5149_s12 }
 0xcde   : > { %p3867_p11 = scmp.lt.u32.totalorder %s3865_s19, %s3861_s17  ;;  %p3869_p13 = scmp.lt.u32.totalorder %s3861_s17, %s5085_s30 }
 0xcdf   : > { %p3863_p7 = pnand %p3862_p6, %p4037_p4 }
 0xce0   : > { %p3868_p12 = por %p3867_p11, %p3866_p10 }
 0xce1   : > { %p3864_p9 = pneg %p3863_p7 }
 0xce2   : > { %p3870_p0 = por %p3869_p13, %p3868_p12 }
 0xce4   : > { %p3871_p1 = pnand %p3870_p0, %p3864_p9 }
 0xce6   : > { %3874 = shalt.err (!%p3871_p1)
}
 0xce7   : > { %s3930_s14 = smov 128   ;;  %s3931_s27 = smov 8  }
 0xce8   : > { %3784 = dma.vmem_to_hbm [thread:$0]  (%p4037_p4), %s5087_s18, 256, %s5085_s30, %s5091_s24, %s3930_s14, %s3930_s14, %s3931_s27  }
 0xce9 PF: > { %p3790_p2 = scmp.ge.s32.totalorder %s3925_s26, 2  ;;  %s3416_s0 = sand.u32 1, %s3905_s21  }
 0xcea   : > { %s3417_s17 = scalar_lea.sflag [#allocation4], %s3416_s0 }
 0xceb   : > { %p3787_p3 = pnand %p3790_p2, %p4044_p8 }
 0xced   : > { %3900 = dma.done.wait (!%p3787_p3), %s3417_s17, 256  }
 0xcee   : > { %3902 = vsyncadd (!%p3787_p3), %s3417_s17, 4294967040  ;;  %s25_s26 = sadd.s32 1, %s3925_s26   ;;  %s5370_s13 = sld [smem:[#allocation6_spill]] }
 0xcef   : > { %p22_p5 = scmp.ge.s32.totalorder %s25_s26, 4   ;;  %s5371_s21 = smov %s3909_s22 }
 0xcf0   : > { %s5372_s22 = smov %s3913_s23  ;;  %s5373_s23 = smov %s4050_s16 }
 0xcf1   : > { %s5374_s24 = smov %s3921_s25  ;;  %24 = sbr.rel (!%p22_p5) target bundleno = 7 (0x7), region = 116 }
 0xcf4   : > { %s5375_s25 = smov %s5370_s13 }
 0xcf8   :  { %3422 = vsyncpa [#allocation4], 1 }
 0xcf9   :  { %3424 = vsyncpa [#allocation4 + $0x1], 1 }

</bundles_post_ra>
